<compile_context>
chip_gen: v7x
topology: tpu7x:2x2x1
jax: 0.10.0
libtpu: 0.0.40
codegen_flags: <defaults>
</compile_context>

<pallas_src>
from functools import partial

import jax
import jax.numpy as jnp
from jax.experimental import pallas as pl
from jax.experimental.pallas import tpu as pltpu


def _minet_rc_lnl_kernel(x_ref, w1_ref, w23_ref, b_ref, wcls_ref, bcls_ref, out_ref,
                         *, n_instances, outw):
    # x_ref: (G*N, D) -- G bags of N instances stacked along the M (row) axis.
    GN, D = x_ref.shape
    H = w1_ref.shape[1]
    N = n_instances
    G = GN // N

    b = b_ref[...]                       # (3, H)
    b1 = b[0:1]                          # (1, H)
    b2 = b[1:2]
    b3 = b[2:3]

    x = x_ref[...]                                                           # (G*N, D)

    # Layer 1 + immediate per-bag max-pool (bounds live ranges; avoids vreg spills).
    h1 = jnp.maximum(
        jnp.dot(x, w1_ref[...], preferred_element_type=jnp.float32) + b1, 0.0)
    p = jnp.max(h1.reshape(G, N, H), axis=1)                                 # (G, H)

    # Layer 2
    h2 = jnp.maximum(
        jnp.dot(h1, w23_ref[0], preferred_element_type=jnp.float32) + b2, 0.0)
    p = p + jnp.max(h2.reshape(G, N, H), axis=1)

    # Layer 3
    h3 = jnp.maximum(
        jnp.dot(h2, w23_ref[1], preferred_element_type=jnp.float32) + b3, 0.0)
    feats = p + jnp.max(h3.reshape(G, N, H), axis=1)                         # (G, H)

    # Fused main + aux classifier heads in one lane-padded matmul: (G, H) @ (H, outw).
    logits_all = jnp.dot(feats, wcls_ref[...],
                         preferred_element_type=jnp.float32) + bcls_ref[...]  # (G, outw)
    preds_all = jax.nn.sigmoid(logits_all)

    # Two lane-aligned (128-multiple) unmasked stores -- no concat temporary.
    out_ref[:, :outw] = preds_all
    out_ref[:, outw:] = logits_all


def pack_params(params):
    """Pack the 10 PyTorch-Linear arrays into 5 VMEM-friendly arrays. Call ONCE."""
    H = params["w1"].shape[1]
    C = params["wc"].shape[1]
    outw = ((2 * C + 127) // 128) * 128                              # lane-padded head width

    w23 = jnp.stack([params["w2"], params["w3"]], axis=0)            # (2, H, H)
    b123 = jnp.concatenate([params["b1"], params["b2"], params["b3"]], axis=0)  # (3, H)
    wcls = (jnp.zeros((H, outw), jnp.float32)
            .at[:, :C].set(params["wc"]).at[:, C:2 * C].set(params["wa"]))
    bcls = (jnp.zeros((1, outw), jnp.float32)
            .at[:, :C].set(params["bc"]).at[:, C:2 * C].set(params["ba"]))
    return dict(w1=params["w1"], w23=w23, b123=b123, wcls=wcls, bcls=bcls)


@partial(jax.jit, static_argnames=("n_classes", "bags_per_step"))
def minet_rc_lnl_forward(x, w1, w23, b123, wcls, bcls, *, n_classes, bags_per_step=None):
    """Batched forward over B bags.

    x: (B, N, D_in) float32.  Packed params from pack_params().
    Returns (preds, preds_aux, logits, logits_aux), each (B, n_classes).
    """
    B, N, D = x.shape
    outw = wcls.shape[1]
    C = n_classes

    # Default: whole batch in ONE grid step (kernel is overhead-bound; everything fits VMEM).
    G = B if bags_per_step is None else min(bags_per_step, B)
    assert B % G == 0, "number of bags must be divisible by bags_per_step"
    assert (G * N) % 8 == 0, "G*N must be a multiple of 8 (sublane alignment)"
    # N == 8 additionally makes the in-kernel (G, N, H) pooling reshape copy-free.

    x2d = x.reshape(B * N, D)                                        # contiguous 2D DMA tile

    grid = (B // G,)
    in_specs = [
        pl.BlockSpec((G * N, D), lambda i: (i, 0)),       # per-step stack of G bags
        pl.BlockSpec(w1.shape, lambda i: (0, 0)),         # weights: constant block index ->
        pl.BlockSpec(w23.shape, lambda i: (0, 0, 0)),     #   DMA'd once, VMEM-resident
        pl.BlockSpec(b123.shape, lambda i: (0, 0)),
        pl.BlockSpec(wcls.shape, lambda i: (0, 0)),
        pl.BlockSpec(bcls.shape, lambda i: (0, 0)),
    ]
    out_specs = pl.BlockSpec((G, 2 * outw), lambda i: (i, 0))
    out_shape = jax.ShapeDtypeStruct((B, 2 * outw), jnp.float32)

    out = pl.pallas_call(
        partial(_minet_rc_lnl_kernel, n_instances=N, outw=outw),
        out_shape=out_shape,
        grid=grid,
        in_specs=in_specs,
        out_specs=out_specs,
        compiler_params=pltpu.CompilerParams(
            dimension_semantics=("parallel",)),           # no-op at grid=(1,)
    )(x2d, w1, w23, b123, wcls, bcls)

    preds = out[:, :C]
    preds_aux = out[:, C:2 * C]
    logits = out[:, outw:outw + C]
    logits_aux = out[:, outw + C:outw + 2 * C]
    return preds, preds_aux, logits, logits_aux


def init_params(key, d_in, hidden, n_classes):
    """Deterministic PyTorch-Linear-style init (uniform +-1/sqrt(fan_in))."""
    ks = jax.random.split(key, 10)

    def lin(kw, kb, fan_in, fan_out):
        bound = 1.0 / jnp.sqrt(fan_in)
        w = jax.random.uniform(kw, (fan_in, fan_out), jnp.float32, -bound, bound)
        b = jax.random.uniform(kb, (1, fan_out), jnp.float32, -bound, bound)
        return w, b

    w1, b1 = lin(ks[0], ks[1], d_in, hidden)
    w2, b2 = lin(ks[2], ks[3], hidden, hidden)
    w3, b3 = lin(ks[4], ks[5], hidden, hidden)
    wc, bc = lin(ks[6], ks[7], hidden, n_classes)
    wa, ba = lin(ks[8], ks[9], hidden, n_classes)
    return dict(w1=w1, b1=b1, w2=w2, b2=b2, w3=w3, b3=b3, wc=wc, bc=bc, wa=wa, ba=ba)


def _reference(x_bags, p):
    """Pure-JAX per-bag reference (vmapped over bags)."""
    def one(x):
        h1 = jnp.maximum(x @ p["w1"] + p["b1"], 0.0)
        h2 = jnp.maximum(h1 @ p["w2"] + p["b2"], 0.0)
        h3 = jnp.maximum(h2 @ p["w3"] + p["b3"], 0.0)
        feats = (jnp.max(h1, 0, keepdims=True) + jnp.max(h2, 0, keepdims=True)
                 + jnp.max(h3, 0, keepdims=True))
        logits = feats @ p["wc"] + p["bc"]
        logits_aux = feats @ p["wa"] + p["ba"]
        return (jax.nn.sigmoid(logits)[0], jax.nn.sigmoid(logits_aux)[0],
                logits[0], logits_aux[0])
    return jax.vmap(one)(x_bags)


if __name__ == "__main__":
    # Small, MIL-consistent shapes: 32 bags of 8 instances with 64-d features,
    # hidden width 32, single class (sigmoid head) -> size=(64, 32), n_classes=1.
    # Whole batch in one grid step: 256 stacked rows per MXU matmul.
    # TODO(synk): n_classes > 1 would use a Softmax head; only the default Sigmoid
    # (n_classes == 1) path is implemented here.
    B, N_INSTANCES, D_IN, HIDDEN, N_CLASSES = 32, 8, 64, 32, 1

    key = jax.random.PRNGKey(0)
    kx, kp = jax.random.split(key)
    x = jax.random.normal(kx, (B, N_INSTANCES, D_IN), jnp.float32)
    params = init_params(kp, D_IN, HIDDEN, N_CLASSES)

    packed = pack_params(params)   # packed once, outside the (jitted) forward path
    outs = minet_rc_lnl_forward(x, packed["w1"], packed["w23"], packed["b123"],
                                packed["wcls"], packed["bcls"], n_classes=N_CLASSES)
    outs = jax.block_until_ready(outs)

    refs = _reference(x, params)
    for o, r in zip(outs, refs):
        assert o.shape == (B, N_CLASSES), (o.shape, (B, N_CLASSES))
        assert jnp.allclose(o, r, atol=1e-5, rtol=1e-5), (o, r)

    print("KERNEL_OK")
</pallas_src>

<mosaic_0001>
module attributes {stable_mosaic.version = 11 : i64} {
  func.func @_minet_rc_lnl_kernel(%arg0: i32, %arg1: memref<256x64xf32, #tpu.memory_space<vmem>>, %arg2: memref<64x32xf32, #tpu.memory_space<vmem>>, %arg3: memref<2x32x32xf32, #tpu.memory_space<vmem>>, %arg4: memref<3x32xf32, #tpu.memory_space<vmem>>, %arg5: memref<32x128xf32, #tpu.memory_space<vmem>>, %arg6: memref<1x128xf32, #tpu.memory_space<vmem>>, %arg7: memref<32x256xf32, #tpu.memory_space<vmem>>) attributes {dimension_semantics = [#tpu.dimension_semantics<parallel>], iteration_bounds = array<i64: 1>, scalar_prefetch = 0 : i64, scratch_operands = 0 : i64, tpu.core_type = #tpu.core_type<tc>, window_params = [{transform_indices = @transform_0, window_bounds = array<i64: 256, 64>}, {pipeline_mode = #tpu.pipeline_mode<synchronous>, transform_indices = @transform_1, window_bounds = array<i64: 64, 32>}, {pipeline_mode = #tpu.pipeline_mode<synchronous>, transform_indices = @transform_2, window_bounds = array<i64: 2, 32, 32>}, {pipeline_mode = #tpu.pipeline_mode<synchronous>, transform_indices = @transform_3, window_bounds = array<i64: 3, 32>}, {pipeline_mode = #tpu.pipeline_mode<synchronous>, transform_indices = @transform_4, window_bounds = array<i64: 32, 128>}, {pipeline_mode = #tpu.pipeline_mode<synchronous>, transform_indices = @transform_5, window_bounds = array<i64: 1, 128>}, {transform_indices = @transform_6, window_bounds = array<i64: 32, 256>}]} {
    %c0 = arith.constant 0 : index
    %c0_0 = arith.constant 0 : index
    %0 = vector.load %arg4[%c0, %c0_0] : memref<3x32xf32, #tpu.memory_space<vmem>>, vector<3x32xf32>
    %1 = vector.extract_strided_slice %0 {offsets = [0, 0], sizes = [1, 32], strides = [1, 1]} : vector<3x32xf32> to vector<1x32xf32>
    %2 = vector.extract_strided_slice %0 {offsets = [1, 0], sizes = [1, 32], strides = [1, 1]} : vector<3x32xf32> to vector<1x32xf32>
    %3 = vector.extract_strided_slice %0 {offsets = [2, 0], sizes = [1, 32], strides = [1, 1]} : vector<3x32xf32> to vector<1x32xf32>
    %c0_1 = arith.constant 0 : index
    %c0_2 = arith.constant 0 : index
    %4 = vector.load %arg1[%c0_1, %c0_2] : memref<256x64xf32, #tpu.memory_space<vmem>>, vector<256x64xf32>
    %c0_3 = arith.constant 0 : index
    %c0_4 = arith.constant 0 : index
    %5 = vector.load %arg2[%c0_3, %c0_4] : memref<64x32xf32, #tpu.memory_space<vmem>>, vector<64x32xf32>
    %cst = arith.constant dense<0.000000e+00> : vector<256x32xf32>
    %6 = tpu.matmul %4, %5, %cst {dimension_numbers = #tpu.dot_dimension_numbers<[1], [0], [0], [1], [0, 0, 1, 1], [], []>} : vector<256x64xf32>, vector<64x32xf32>, vector<256x32xf32> -> vector<256x32xf32>
    %7 = vector.broadcast %1 : vector<1x32xf32> to vector<256x32xf32>
    %8 = arith.addf %6, %7 : vector<256x32xf32>
    %cst_5 = arith.constant 0.000000e+00 : f32
    %9 = vector.broadcast %cst_5 : f32 to vector<256x32xf32>
    %10 = arith.maximumf %8, %9 : vector<256x32xf32>
    %11 = vector.shape_cast %10 : vector<256x32xf32> to vector<32x8x32xf32>
    %cst_6 = arith.constant dense<0xFF800000> : vector<32x32xf32>
    %12 = vector.multi_reduction <maximumf>, %11, %cst_6 [1] : vector<32x8x32xf32> to vector<32x32xf32>
    %c0_7 = arith.constant 0 : index
    %c0_8 = arith.constant 0 : index
    %c0_9 = arith.constant 0 : index
    %13 = vector.load %arg3[%c0_7, %c0_8, %c0_9] : memref<2x32x32xf32, #tpu.memory_space<vmem>>, vector<1x32x32xf32>
    %14 = vector.shape_cast %13 : vector<1x32x32xf32> to vector<32x32xf32>
    %cst_10 = arith.constant dense<0.000000e+00> : vector<256x32xf32>
    %15 = tpu.matmul %10, %14, %cst_10 {dimension_numbers = #tpu.dot_dimension_numbers<[1], [0], [0], [1], [0, 0, 1, 1], [], []>} : vector<256x32xf32>, vector<32x32xf32>, vector<256x32xf32> -> vector<256x32xf32>
    %16 = vector.broadcast %2 : vector<1x32xf32> to vector<256x32xf32>
    %17 = arith.addf %15, %16 : vector<256x32xf32>
    %cst_11 = arith.constant 0.000000e+00 : f32
    %18 = vector.broadcast %cst_11 : f32 to vector<256x32xf32>
    %19 = arith.maximumf %17, %18 : vector<256x32xf32>
    %20 = vector.shape_cast %19 : vector<256x32xf32> to vector<32x8x32xf32>
    %cst_12 = arith.constant dense<0xFF800000> : vector<32x32xf32>
    %21 = vector.multi_reduction <maximumf>, %20, %cst_12 [1] : vector<32x8x32xf32> to vector<32x32xf32>
    %22 = arith.addf %12, %21 : vector<32x32xf32>
    %c1 = arith.constant 1 : index
    %c0_13 = arith.constant 0 : index
    %c0_14 = arith.constant 0 : index
    %23 = vector.load %arg3[%c1, %c0_13, %c0_14] : memref<2x32x32xf32, #tpu.memory_space<vmem>>, vector<1x32x32xf32>
    %24 = vector.shape_cast %23 : vector<1x32x32xf32> to vector<32x32xf32>
    %cst_15 = arith.constant dense<0.000000e+00> : vector<256x32xf32>
    %25 = tpu.matmul %19, %24, %cst_15 {dimension_numbers = #tpu.dot_dimension_numbers<[1], [0], [0], [1], [0, 0, 1, 1], [], []>} : vector<256x32xf32>, vector<32x32xf32>, vector<256x32xf32> -> vector<256x32xf32>
    %26 = vector.broadcast %3 : vector<1x32xf32> to vector<256x32xf32>
    %27 = arith.addf %25, %26 : vector<256x32xf32>
    %cst_16 = arith.constant 0.000000e+00 : f32
    %28 = vector.broadcast %cst_16 : f32 to vector<256x32xf32>
    %29 = arith.maximumf %27, %28 : vector<256x32xf32>
    %30 = vector.shape_cast %29 : vector<256x32xf32> to vector<32x8x32xf32>
    %cst_17 = arith.constant dense<0xFF800000> : vector<32x32xf32>
    %31 = vector.multi_reduction <maximumf>, %30, %cst_17 [1] : vector<32x8x32xf32> to vector<32x32xf32>
    %32 = arith.addf %22, %31 : vector<32x32xf32>
    %c0_18 = arith.constant 0 : index
    %c0_19 = arith.constant 0 : index
    %33 = vector.load %arg5[%c0_18, %c0_19] : memref<32x128xf32, #tpu.memory_space<vmem>>, vector<32x128xf32>
    %cst_20 = arith.constant dense<0.000000e+00> : vector<32x128xf32>
    %34 = tpu.matmul %32, %33, %cst_20 {dimension_numbers = #tpu.dot_dimension_numbers<[1], [0], [0], [1], [0, 0, 1, 1], [], []>} : vector<32x32xf32>, vector<32x128xf32>, vector<32x128xf32> -> vector<32x128xf32>
    %c0_21 = arith.constant 0 : index
    %c0_22 = arith.constant 0 : index
    %35 = vector.load %arg6[%c0_21, %c0_22] : memref<1x128xf32, #tpu.memory_space<vmem>>, vector<1x128xf32>
    %36 = vector.broadcast %35 : vector<1x128xf32> to vector<32x128xf32>
    %37 = arith.addf %34, %36 : vector<32x128xf32>
    %38 = arith.negf %37 : vector<32x128xf32>
    %39 = math.exp %38 : vector<32x128xf32>
    %cst_23 = arith.constant 1.000000e+00 : f32
    %40 = vector.broadcast %cst_23 : f32 to vector<32x128xf32>
    %41 = arith.addf %40, %39 : vector<32x128xf32>
    %42 = arith.divf %40, %41 : vector<32x128xf32>
    %c0_24 = arith.constant 0 : index
    %c0_25 = arith.constant 0 : index
    %43 = vector.load %arg7[%c0_24, %c0_25] : memref<32x256xf32, #tpu.memory_space<vmem>>, vector<32x128xf32>
    tpu.vector_store %arg7[%c0_24, %c0_25], %42 {strides = array<i32>} : memref<32x256xf32, #tpu.memory_space<vmem>>, vector<32x128xf32>,
    %c0_26 = arith.constant 0 : index
    %c128 = arith.constant 128 : index
    %44 = vector.load %arg7[%c0_26, %c128] : memref<32x256xf32, #tpu.memory_space<vmem>>, vector<32x128xf32>
    tpu.vector_store %arg7[%c0_26, %c128], %37 {strides = array<i32>} : memref<32x256xf32, #tpu.memory_space<vmem>>, vector<32x128xf32>,
    return
  }
  func.func @transform_0(%arg0: i32) -> (i32, i32) {
    %c0_i32 = arith.constant 0 : i32
    %c0_i32_0 = arith.constant 0 : i32
    return %arg0, %c0_i32 : i32, i32
  }
  func.func @transform_1(%arg0: i32) -> (i32, i32) {
    %c0_i32 = arith.constant 0 : i32
    %c0_i32_0 = arith.constant 0 : i32
    %c0_i32_1 = arith.constant 0 : i32
    return %c0_i32, %c0_i32_0 : i32, i32
  }
  func.func @transform_2(%arg0: i32) -> (i32, i32, i32) {
    %c0_i32 = arith.constant 0 : i32
    %c0_i32_0 = arith.constant 0 : i32
    %c0_i32_1 = arith.constant 0 : i32
    %c0_i32_2 = arith.constant 0 : i32
    return %c0_i32, %c0_i32_0, %c0_i32_1 : i32, i32, i32
  }
  func.func @transform_3(%arg0: i32) -> (i32, i32) {
    %c0_i32 = arith.constant 0 : i32
    %c0_i32_0 = arith.constant 0 : i32
    %c0_i32_1 = arith.constant 0 : i32
    return %c0_i32, %c0_i32_0 : i32, i32
  }
  func.func @transform_4(%arg0: i32) -> (i32, i32) {
    %c0_i32 = arith.constant 0 : i32
    %c0_i32_0 = arith.constant 0 : i32
    %c0_i32_1 = arith.constant 0 : i32
    return %c0_i32, %c0_i32_0 : i32, i32
  }
  func.func @transform_5(%arg0: i32) -> (i32, i32) {
    %c0_i32 = arith.constant 0 : i32
    %c0_i32_0 = arith.constant 0 : i32
    %c0_i32_1 = arith.constant 0 : i32
    return %c0_i32, %c0_i32_0 : i32, i32
  }
  func.func @transform_6(%arg0: i32) -> (i32, i32) {
    %c0_i32 = arith.constant 0 : i32
    %c0_i32_0 = arith.constant 0 : i32
    return %arg0, %c0_i32 : i32, i32
  }
}

</mosaic_0001>

<bundles_post_ra>
// kernel: minet_rc_lnl_forward.1
= control target key start
LH: loop header
LB: loop body
LE: loop exit
PB: predicated region body
PF: predicated region fallthrough
CT: control target
= control target key end

     0   :  { %11 = vsyncpa [#allocation3], 0  ;;  %s2611_s21 = smov [#allocation2]   ;;  %s3550_s0 = inlined_call_operand.hbm [shape: f32[256,64], index: 0, kind: input, shape index: {}]   ;;  %s3551_s1 = inlined_call_operand.vmem [shape: f32[64,32], index: 1, kind: input, shape index: {}]   ;;  %s3552_s2 = inlined_call_operand.vmem [shape: f32[2,32,32], index: 2, kind: input, shape index: {}]   ;;  %s3553_s3 = inlined_call_operand.vmem [shape: f32[3,32], index: 3, kind: input, shape index: {}]   ;;  %s3554_s4 = inlined_call_operand.vmem [shape: f32[32,128], index: 4, kind: input, shape index: {}]   ;;  %s3555_s5 = inlined_call_operand.vmem [shape: f32[1,128], index: 5, kind: input, shape index: {}]   ;;  %s3556_s6 = inlined_call_operand.vmem [shape: f32[32,256], index: 6, kind: output, shape index: {}]  }
   0x1   :  { %s17_s22 = sshll.u32 %s2611_s21, 4  ;;  %s2587_s25 = scalar_lea.hbm %s3550_s0, 4096  ;;  %s18_s22 = int_to_ptr.vmem [resolvable:$true] %s17_s22 }
   0x2   :  { %p2588_p0 = scmp.ne.s32.totalorder %s3550_s0, %s2587_s25  ;;  %p2591_p1 = scmp.lt.u32.totalorder %s2587_s25, %s3550_s0 }
   0x4   :  { %p2593_p2 = pnand %p2591_p1, %p2588_p0 }
   0x6   :  { %2596 = shalt.err (!%p2593_p2)
}
   0x7   :  { %s2597_s30 = scalar_lea.vmem %s18_s22, 4096  ;;  %p2602_p4 = scmp.lt.s32.totalorder %s18_s22, %s18_s22 }
   0x8   :  { %p2598_p3 = scmp.ne.s32.totalorder %s18_s22, %s2597_s30  ;;  %p2603_p5 = scmp.lt.s32.totalorder %s2597_s30, %s2597_s30 }
   0xa   :  { %p2604_p6 = por %p2603_p5, %p2602_p4 }
   0xc   :  { %p2605_p7 = pnand %p2604_p6, %p2598_p3 }
   0xe   :  { %2608 = shalt.err (!%p2605_p7)
}
   0xf   :  { %s2612_s7 = smov 128   ;;  %s2613_s8 = smov 8  }
  0x10   :  { %23 = dma.hbm_to_vmem [thread:$0]  %s3550_s0, 4096, %s18_s22, [#allocation3], %s2612_s7, %s2612_s7, %s2613_s8  }
  0x11   :  { %2609 = dma.done.wait [#allocation3], 4096  }
  0x12   :  { %2610 = vsyncadd [#allocation3], 4294963200  ;;  %v70_v0 = vld [vmem:[%s3551_s1] sm:$0xff]  ;;  %v71_v1 = vld [vmem:[%s3551_s1 + $0x8] sm:$0xff]  ;;  %vm82_vm0 = vcmask 523264   ;;  %v78_v53 = vlaneseq  ;;  %vm436_vm1 = vcmask 261120  }
  0x13   :  { %v72_v2 = vld [vmem:[%s3551_s1 + $0x10] sm:$0xff]  ;;  %v2523_v3 = vpack.c.bf16 %v71_v1, %v70_v0  ;;  %v73_v4 = vld [vmem:[%s3551_s1 + $0x18] sm:$0xff]  ;;  %v74_v6 = vld [vmem:[%s3551_s1 + $0x20] sm:$0xff]  ;;  %vm1939_vm2 = vcmask 1041409   ;;  %vm1941_vm3 = vcmask 1042434   ;;  %vm1943_vm4 = vcmask 1043459  }
  0x14   :  { %v2527_v5 = vpack.c.bf16 %v73_v4, %v72_v2  ;;  %v75_v7 = vld [vmem:[%s3551_s1 + $0x28] sm:$0xff]  ;;  %v38_v8 = vld [vmem:[#allocation2] sm:$0xff]  ;;  %v76_v10 = vld [vmem:[%s3551_s1 + $0x30] sm:$0xff]  ;;  %v2738_v54 = vshrl.u32 %v78_v53, 7  ;;  %vm1945_vm5 = vcmask 1044484   ;;  %vm1947_vm6 = vcmask 1045509  }
  0x15   :  { %2524 = vmatprep.subr.bf16.mxu0 %v2523_v3  ;;  %2349 = vmatprep.mubr.msk.f32.mxu0 %vm82_vm0, %v38_v8  ;;  %v2531_v9 = vpack.c.bf16 %v75_v7, %v74_v6  ;;  %v77_v11 = vld [vmem:[%s3551_s1 + $0x38] sm:$0xff]  ;;  %v661_v13 = vld [vmem:[%s3552_s2] sm:$0xff]  ;;  %v662_v14 = vld [vmem:[%s3552_s2 + $0x8] sm:$0xff]  ;;  %vm1949_vm7 = vcmask 1046534   ;;  %vm1951_vm8 = vcmask 1047559  }
  0x16   :  { %2526 = vmatpush3.bf16.msra.mxu0 %v2523_v3  ;;  %v2535_v12 = vpack.c.bf16 %v77_v11, %v76_v10  ;;  %v2539_v15 = vpack.c.bf16 %v662_v14, %v661_v13  ;;  %v663_v16 = vld [vmem:[%s3552_s2 + $0x10] sm:$0xff]  ;;  %v664_v17 = vld [vmem:[%s3552_s2 + $0x18] sm:$0xff]  ;;  %v39_v18 = vld [vmem:[#allocation2 + $0x8] sm:$0xff]  ;;  %v80_v55 = vsub.s32 0, %v2738_v54 }
  0x17   :  { %2528 = vmatprep.subr.bf16.mxu0 %v2527_v5  ;;  %v2543_v19 = vpack.c.bf16 %v664_v17, %v663_v16  ;;  %v40_v20 = vld [vmem:[#allocation2 + $0x10] sm:$0xff]  ;;  %v41_v21 = vld [vmem:[#allocation2 + $0x18] sm:$0xff]  ;;  %v42_v22 = vld [vmem:[#allocation2 + $0x20] sm:$0xff] }
  0x18   :  { %2563 = vmatprep.subr.bf16.mxu1 %v2539_v15  ;;  %v43_v23 = vld [vmem:[#allocation2 + $0x28] sm:$0xff]  ;;  %v44_v24 = vld [vmem:[#allocation2 + $0x30] sm:$0xff]  ;;  %v45_v25 = vld [vmem:[#allocation2 + $0x38] sm:$0xff] }
  0x19   :  { %2565 = vmatpush3.bf16.msra.mxu1 %v2539_v15  ;;  %v46_v26 = vld [vmem:[#allocation2 + $0x40] sm:$0xff]  ;;  %v47_v27 = vld [vmem:[#allocation2 + $0x48] sm:$0xff]  ;;  %v48_v28 = vld [vmem:[#allocation2 + $0x50] sm:$0xff] }
  0x1a   :  { %2530 = vmatpush3.bf16.msra.mxu0 %v2527_v5  ;;  %2564 = vmatprep.subr.bf16.mxu1 %v2543_v19  ;;  %v49_v29 = vld [vmem:[#allocation2 + $0x58] sm:$0xff]  ;;  %v50_v30 = vld [vmem:[#allocation2 + $0x60] sm:$0xff]  ;;  %v51_v31 = vld [vmem:[#allocation2 + $0x68] sm:$0xff] }
  0x1b   :  { %2532 = vmatprep.subr.bf16.mxu0 %v2531_v9  ;;  %v52_v32 = vld [vmem:[#allocation2 + $0x70] sm:$0xff]  ;;  %v53_v33 = vld [vmem:[#allocation2 + $0x78] sm:$0xff]  ;;  %v54_v34 = vld [vmem:[#allocation2 + $0x80] sm:$0xff] }
  0x1c   :  { %v55_v35 = vld [vmem:[#allocation2 + $0x88] sm:$0xff]  ;;  %v56_v36 = vld [vmem:[#allocation2 + $0x90] sm:$0xff]  ;;  %v57_v37 = vld [vmem:[#allocation2 + $0x98] sm:$0xff] }
  0x1d   :  { %2566 = vmatpush3.bf16.msra.mxu1 %v2543_v19  ;;  %v58_v38 = vld [vmem:[#allocation2 + $0xa0] sm:$0xff]  ;;  %v59_v39 = vld [vmem:[#allocation2 + $0xa8] sm:$0xff]  ;;  %v60_v40 = vld [vmem:[#allocation2 + $0xb0] sm:$0xff] }
  0x1e   :  { %2534 = vmatpush3.bf16.msra.mxu0 %v2531_v9  ;;  %v61_v41 = vld [vmem:[#allocation2 + $0xb8] sm:$0xff]  ;;  %v62_v42 = vld [vmem:[#allocation2 + $0xc0] sm:$0xff]  ;;  %v63_v43 = vld [vmem:[#allocation2 + $0xc8] sm:$0xff] }
  0x1f   :  { %2536 = vmatprep.subr.bf16.mxu0 %v2535_v12  ;;  %v64_v44 = vld [vmem:[#allocation2 + $0xd0] sm:$0xff]  ;;  %v65_v45 = vld [vmem:[#allocation2 + $0xd8] sm:$0xff]  ;;  %v66_v46 = vld [vmem:[#allocation2 + $0xe0] sm:$0xff] }
  0x20   :  { %v67_v47 = vld [vmem:[#allocation2 + $0xe8] sm:$0xff]  ;;  %v68_v48 = vld [vmem:[#allocation2 + $0xf0] sm:$0xff]  ;;  %v69_v49 = vld [vmem:[#allocation2 + $0xf8] sm:$0xff] }
  0x21   :  { %v2168_v50 = vld [vmem:[%s3552_s2 + $0x20] sm:$0xff]  ;;  %v2169_v51 = vld [vmem:[%s3552_s2 + $0x28] sm:$0xff] }
  0x22   :  { %2538 = vmatpush3.bf16.msra.mxu0 %v2535_v12  ;;  %v2735_v52 = vpack.c.bf16 %v2169_v51, %v2168_v50  ;;  %v2744_v56 = vld [vmem:[%s3553_s3] sm:$0x7] }
  0x23   :  { %2540 = vmatprep.subr.bf16.mxu0 %v2539_v15  ;;  %v2747_v57 = vrot.slane %v2744_v56, %v80_v55 }
  0x24   :  { %2548 = vmatprep.subr.bf16.mxu1 %v2735_v52 }
  0x25   :  { %2350 = vmatmul.mubr.msk.f32.vlgmr.msra.gmra.mrb[0].mxu0 %vm82_vm0, %v39_v18 }
  0x26   :  { %2352 = vmatprep.mubr.msk.f32.mxu0 %vm82_vm0, %v40_v20  ;;  %2542 = vmatpush3.bf16.msra.mxu0 %v2539_v15 }
  0x27   :  { %2544 = vmatprep.subr.bf16.mxu0 %v2543_v19 }
  0x29   :  { %2353 = vmatmul.mubr.msk.f32.gmra.mrb[2].mxu0 %vm82_vm0, %v41_v21 }
  0x2a   :  { %2355 = vmatprep.mubr.msk.f32.mxu0 %vm82_vm0, %v42_v22  ;;  %2546 = vmatpush3.bf16.msra.mxu0 %v2543_v19 }
  0x2d   :  { %2356 = vmatmul.mubr.msk.f32.gmra.mrb[4].mxu0 %vm82_vm0, %v43_v23 }
  0x2e   :  { %2358 = vmatprep.mubr.msk.f32.mxu0 %vm82_vm0, %v44_v24 }
  0x31   :  { %2359 = vmatmul.mubr.msk.f32.gmra.mrb[6].mxu0 %vm82_vm0, %v45_v25 }
  0x32   :  { %2361 = vmatprep.mubr.msk.f32.mxu0 %vm82_vm0, %v46_v26 }
  0x35   :  { %2362 = vmatmul.mubr.msk.f32.gmra.mrb[8].mxu0 %vm82_vm0, %v47_v27 }
  0x36   :  { %2364 = vmatprep.mubr.msk.f32.mxu0 %vm82_vm0, %v48_v28 }
  0x39   :  { %2365 = vmatmul.mubr.msk.f32.gmra.mrb[10].mxu0 %vm82_vm0, %v49_v29 }
  0x3a   :  { %2367 = vmatprep.mubr.msk.f32.mxu0 %vm82_vm0, %v50_v30 }
  0x3d   :  { %2368 = vmatmul.mubr.msk.f32.gmra.mrb[12].mxu0 %vm82_vm0, %v51_v31 }
  0x3e   :  { %2370 = vmatprep.mubr.msk.f32.mxu0 %vm82_vm0, %v52_v32 }
  0x41   :  { %2371 = vmatmul.mubr.msk.f32.gmra.mrb[14].mxu0 %vm82_vm0, %v53_v33 }
  0x42   :  { %2373 = vmatprep.mubr.msk.f32.mxu0 %vm82_vm0, %v54_v34 }
  0x45   :  { %2374 = vmatmul.mubr.msk.f32.gmra.mrb[16].mxu0 %vm82_vm0, %v55_v35  ;;  %v2170_v35 = vld [vmem:[%s3552_s2 + $0x30] sm:$0xff] }
  0x46   :  { %2376 = vmatprep.mubr.msk.f32.mxu0 %vm82_vm0, %v56_v36  ;;  %v2171_v36 = vld [vmem:[%s3552_s2 + $0x38] sm:$0xff] }
  0x49   :  { %2377 = vmatmul.mubr.msk.f32.gmra.mrb[18].mxu0 %vm82_vm0, %v57_v37 }
  0x4a   :  { %2379 = vmatprep.mubr.msk.f32.mxu0 %vm82_vm0, %v58_v38 }
  0x4d   :  { %2380 = vmatmul.mubr.msk.f32.gmra.mrb[20].mxu0 %vm82_vm0, %v59_v39 }
  0x4e   :  { %2382 = vmatprep.mubr.msk.f32.mxu0 %vm82_vm0, %v60_v40  ;;  %v2551_v40 = vpack.c.bf16 %v2171_v36, %v2170_v35 }
  0x51   :  { %2383 = vmatmul.mubr.msk.f32.gmra.mrb[22].mxu0 %vm82_vm0, %v61_v41 }
  0x52   :  { %2385 = vmatprep.mubr.msk.f32.mxu0 %vm82_vm0, %v62_v42 }
  0x55   :  { %2386 = vmatmul.mubr.msk.f32.gmra.mrb[24].mxu0 %vm82_vm0, %v63_v43 }
  0x56   :  { %2388 = vmatprep.mubr.msk.f32.mxu0 %vm82_vm0, %v64_v44 }
  0x59   :  { %2389 = vmatmul.mubr.msk.f32.gmra.mrb[26].mxu0 %vm82_vm0, %v65_v45 }
  0x5a   :  { %2391 = vmatprep.mubr.msk.f32.mxu0 %vm82_vm0, %v66_v46 }
  0x5d   :  { %2392 = vmatmul.mubr.msk.f32.gmra.mrb[28].mxu0 %vm82_vm0, %v67_v47 }
  0x5e   :  { %2394 = vmatprep.mubr.msk.f32.mxu0 %vm82_vm0, %v68_v48 }
  0x61   :  { %2395 = vmatmul.mubr.msk.f32.gmra.mrb[30].mxu0 %vm82_vm0, %v69_v49 }
  0xf8   :  { %v2351_v58 = vpop.f32.mrb[0].mxu0 }
  0xf9   :  { %v2750_v59 = vadd.f32 %v2351_v58, %v2747_v57  ;;  %v245_v60 = vpop.f32.mrb[1].mxu0 }
  0xfa   :  { %v2753_v61 = vadd.f32 %v245_v60, %v2747_v57 }
  0xfb   :  { %v405_v0 = vmax.f32 %v2750_v59, 0.0 }
  0xfc   :  { %v404_v62 = vmax.f32 %v2753_v61, 0.0  ;;  %v2354_v63 = vpop.f32.mrb[2].mxu0 }
  0xfd   :  { %v2758_v1 = vadd.f32 %v2354_v63, %v2747_v57  ;;  %v255_v2 = vpop.f32.mrb[3].mxu0 }
  0xfe   :  { %v2761_v3 = vadd.f32 %v255_v2, %v2747_v57  ;;  %2405 = vmatprep.mubr.msk.f32.mxu0 %vm436_vm1, %v404_v62 }
  0xff   :  { %2406 = vmatmul.mubr.msk.f32.vlgmr.msra.gmra.mrb[32].mxu0 %vm436_vm1, %v405_v0  ;;  %v407_v6 = vmax.f32 %v2758_v1, 0.0 }
 0x100   :  { %v406_v4 = vmax.f32 %v2761_v3, 0.0  ;;  %v2357_v5 = vpop.f32.mrb[4].mxu0 }
 0x101   :  { %v2772_v7 = vadd.f32 %v2357_v5, %v2747_v57  ;;  %v265_v8 = vpop.f32.mrb[5].mxu0 }
 0x102   :  { %v2775_v9 = vadd.f32 %v265_v8, %v2747_v57  ;;  %2408 = vmatprep.mubr.msk.f32.mxu0 %vm436_vm1, %v406_v4 }
 0x103   :  { %2409 = vmatmul.mubr.msk.f32.gmra.mrb[34].mxu0 %vm436_vm1, %v407_v6  ;;  %v409_v12 = vmax.f32 %v2772_v7, 0.0 }
 0x104   :  { %v408_v10 = vmax.f32 %v2775_v9, 0.0  ;;  %v2360_v11 = vpop.f32.mrb[6].mxu0 }
 0x105   :  { %v275_v13 = vpop.f32.mrb[7].mxu0  ;;  %v2789_v14 = vadd.f32 %v2360_v11, %v2747_v57 }
 0x106   :  { %2411 = vmatprep.mubr.msk.f32.mxu0 %vm436_vm1, %v408_v10  ;;  %v2795_v15 = vadd.f32 %v275_v13, %v2747_v57  ;;  %v465_v59 = vsel %vm436_vm1, %v408_v10, -inf }
 0x107   :  { %2412 = vmatmul.mubr.msk.f32.gmra.mrb[36].mxu0 %vm436_vm1, %v409_v12  ;;  %v411_v19 = vmax.f32 %v2789_v14, 0.0 }
 0x108   :  { %v2363_v16 = vpop.f32.mrb[8].mxu0  ;;  %v410_v18 = vmax.f32 %v2795_v15, 0.0 }
 0x109   :  { %v285_v17 = vpop.f32.mrb[9].mxu0  ;;  %v2800_v20 = vadd.f32 %v2363_v16, %v2747_v57 }
 0x10a   :  { %v2803_v21 = vadd.f32 %v285_v17, %v2747_v57  ;;  %2414 = vmatprep.mubr.msk.f32.mxu0 %vm436_vm1, %v410_v18  ;;  %v479_v1 = vsel %vm436_vm1, %v410_v18, -inf }
 0x10b   :  { %2415 = vmatmul.mubr.msk.f32.gmra.mrb[38].mxu0 %vm436_vm1, %v411_v19  ;;  %v413_v25 = vmax.f32 %v2800_v20, 0.0 }
 0x10c   :  { %v2366_v22 = vpop.f32.mrb[10].mxu0  ;;  %v412_v24 = vmax.f32 %v2803_v21, 0.0 }
 0x10d   :  { %v295_v23 = vpop.f32.mrb[11].mxu0  ;;  %v2814_v26 = vadd.f32 %v2366_v22, %v2747_v57  ;;  %v500_v7 = vsel %vm436_vm1, %v413_v25, -inf }
 0x10e   :  { %v2817_v27 = vadd.f32 %v295_v23, %v2747_v57  ;;  %2417 = vmatprep.mubr.msk.f32.mxu0 %vm436_vm1, %v412_v24  ;;  %v493_v10 = vsel %vm436_vm1, %v412_v24, -inf }
 0x10f   :  { %2418 = vmatmul.mubr.msk.f32.gmra.mrb[40].mxu0 %vm436_vm1, %v413_v25  ;;  %v415_v31 = vmax.f32 %v2814_v26, 0.0 }
 0x110   :  { %v2369_v28 = vpop.f32.mrb[12].mxu0  ;;  %v414_v30 = vmax.f32 %v2817_v27, 0.0 }
 0x111   :  { %v305_v29 = vpop.f32.mrb[13].mxu0  ;;  %v2828_v32 = vadd.f32 %v2369_v28, %v2747_v57  ;;  %v514_v14 = vsel %vm436_vm1, %v415_v31, -inf }
 0x112   :  { %v2831_v33 = vadd.f32 %v305_v29, %v2747_v57  ;;  %2420 = vmatprep.mubr.msk.f32.mxu0 %vm436_vm1, %v414_v30  ;;  %v507_v20 = vsel %vm436_vm1, %v414_v30, -inf }
 0x113   :  { %2421 = vmatmul.mubr.msk.f32.gmra.mrb[42].mxu0 %vm436_vm1, %v415_v31  ;;  %v417_v39 = vmax.f32 %v2828_v32, 0.0 }
 0x114   :  { %v2372_v34 = vpop.f32.mrb[14].mxu0  ;;  %v416_v38 = vmax.f32 %v2831_v33, 0.0 }
 0x115   :  { %v315_v37 = vpop.f32.mrb[15].mxu0  ;;  %v2851_v42 = vadd.f32 %v2372_v34, %v2747_v57  ;;  %v528_v30 = vsel %vm436_vm1, %v417_v39, -inf }
 0x116   :  { %2423 = vmatprep.mubr.msk.f32.mxu1 %vm436_vm1, %v416_v38  ;;  %v2857_v44 = vadd.f32 %v315_v37, %v2747_v57 }
 0x117   :  { %2424 = vmatmul.mubr.msk.f32.vlgmr.msra.gmra.mrb[0].mxu1 %vm436_vm1, %v417_v39  ;;  %v419_v47 = vmax.f32 %v2851_v42, 0.0 }
 0x118   :  { %v2375_v41 = vpop.f32.mrb[16].mxu0  ;;  %2550 = vmatpush3.bf16.msra.mxu1 %v2735_v52  ;;  %v418_v45 = vmax.f32 %v2857_v44, 0.0 }
 0x119   :  { %v325_v43 = vpop.f32.mrb[17].mxu0  ;;  %2552 = vmatprep.subr.bf16.mxu1 %v2551_v40  ;;  %v2863_v48 = vadd.f32 %v2375_v41, %v2747_v57 }
 0x11a   :  { %v2866_v49 = vadd.f32 %v325_v43, %v2747_v57  ;;  %2426 = vmatprep.mubr.msk.f32.mxu1 %vm436_vm1, %v418_v45 }
 0x11b   :  { %2427 = vmatmul.mubr.msk.f32.gmra.mrb[2].mxu1 %vm436_vm1, %v419_v47  ;;  %v3572_v53 = vmax.f32 %v2863_v48, 0.0 }
 0x11c   :  { %v2378_v46 = vpop.f32.mrb[18].mxu0  ;;  %2554 = vmatpush3.bf16.msra.mxu1 %v2551_v40  ;;  %v3571_v51 = vmax.f32 %v2866_v49, 0.0 }
 0x11d   :  { %v335_v50 = vpop.f32.mrb[19].mxu0  ;;  %v2877_v55 = vadd.f32 %v2378_v46, %v2747_v57 }
 0x11e   :  { %v2880_v58 = vadd.f32 %v335_v50, %v2747_v57  ;;  %2429 = vmatprep.mubr.msk.f32.mxu1 %vm436_vm1, %v3571_v51 }
 0x11f   :  { %2430 = vmatmul.mubr.msk.f32.gmra.mrb[4].mxu1 %vm436_vm1, %v3572_v53  ;;  %v3570_v5 = vmax.f32 %v2877_v55, 0.0  ;;  %v508_v53 = vrot.slane %v507_v20, 4 }
 0x120   :  { %v2381_v52 = vpop.f32.mrb[20].mxu0  ;;  %v3569_v63 = vmax.f32 %v2880_v58, 0.0 }
 0x121   :  { %v345_v60 = vpop.f32.mrb[21].mxu0  ;;  %v2891_v8 = vadd.f32 %v2381_v52, %v2747_v57 }
 0x122   :  { %v2894_v11 = vadd.f32 %v345_v60, %v2747_v57  ;;  %2432 = vmatprep.mubr.msk.f32.mxu1 %vm436_vm1, %v3569_v63 }
 0x123   :  { %2433 = vmatmul.mubr.msk.f32.gmra.mrb[6].mxu1 %vm436_vm1, %v3570_v5  ;;  %v3568_v22 = vmax.f32 %v2891_v8, 0.0 }
 0x124   :  { %v2384_v2 = vpop.f32.mrb[22].mxu0  ;;  %v3567_v16 = vmax.f32 %v2894_v11, 0.0 }
 0x125   :  { %v355_v13 = vpop.f32.mrb[23].mxu0  ;;  %v2908_v28 = vadd.f32 %v2384_v2, %v2747_v57 }
 0x126   :  { %2435 = vmatprep.mubr.msk.f32.mxu1 %vm436_vm1, %v3567_v16  ;;  %v2914_v29 = vadd.f32 %v355_v13, %v2747_v57  ;;  %v494_v16 = vrot.slane %v493_v10, 4 }
 0x127   :  { %2436 = vmatmul.mubr.msk.f32.gmra.mrb[8].mxu1 %vm436_vm1, %v3568_v22  ;;  %v3566_v37 = vmax.f32 %v2908_v28, 0.0  ;;  %v515_v22 = vrot.slane %v514_v14, 4 }
 0x128   :  { %v2387_v17 = vpop.f32.mrb[24].mxu0  ;;  %v3557_v36 = vmax.f32 %v2914_v29, 0.0 }
 0x129   :  { %v365_v23 = vpop.f32.mrb[25].mxu0  ;;  %v2919_v40 = vadd.f32 %v2387_v17, %v2747_v57 }
 0x12a   :  { %v2922_v41 = vadd.f32 %v365_v23, %v2747_v57  ;;  %2438 = vmatprep.mubr.msk.f32.mxu1 %vm436_vm1, %v3557_v36 }
 0x12b   :  { %2439 = vmatmul.mubr.msk.f32.gmra.mrb[10].mxu1 %vm436_vm1, %v3566_v37  ;;  %v3559_v52 = vmax.f32 %v2919_v40, 0.0  ;;  %v501_v37 = vrot.slane %v500_v7, 4 }
 0x12c   :  { %v2390_v34 = vpop.f32.mrb[26].mxu0  ;;  %v3558_v50 = vmax.f32 %v2922_v41, 0.0 }
 0x12d   :  { %v375_v35 = vpop.f32.mrb[27].mxu0  ;;  %v2933_v60 = vadd.f32 %v2390_v34, %v2747_v57 }
 0x12e   :  { %v2936_v2 = vadd.f32 %v375_v35, %v2747_v57  ;;  %2441 = vmatprep.mubr.msk.f32.mxu1 %vm436_vm1, %v3558_v50 }
 0x12f   :  { %2442 = vmatmul.mubr.msk.f32.gmra.mrb[12].mxu1 %vm436_vm1, %v3559_v52  ;;  %v3561_v36 = vmax.f32 %v2933_v60, 0.0 }
 0x130   :  { %v2393_v43 = vpop.f32.mrb[28].mxu0  ;;  %v3560_v23 = vmax.f32 %v2936_v2, 0.0 }
 0x131   :  { %v385_v46 = vpop.f32.mrb[29].mxu0  ;;  %v2947_v34 = vadd.f32 %v2393_v43, %v2747_v57 }
 0x132   :  { %v2950_v35 = vadd.f32 %v385_v46, %v2747_v57  ;;  %2444 = vmatprep.mubr.msk.f32.mxu1 %vm436_vm1, %v3560_v23 }
 0x133   :  { %2445 = vmatmul.mubr.msk.f32.gmra.mrb[14].mxu1 %vm436_vm1, %v3561_v36  ;;  %v3565_v52 = vmax.f32 %v2947_v34, 0.0 }
 0x134   :  { %v2396_v13 = vpop.f32.mrb[30].mxu0  ;;  %v3563_v50 = vmax.f32 %v2950_v35, 0.0 }
 0x135   :  { %v395_v17 = vpop.f32.mrb[31].mxu0  ;;  %v2964_v43 = vadd.f32 %v2396_v13, %v2747_v57  ;;  %v444_v13 = vsel %vm436_vm1, %v405_v0, -inf }
 0x136   :  { %2447 = vmatprep.mubr.msk.f32.mxu1 %vm436_vm1, %v3563_v50  ;;  %v2970_v46 = vadd.f32 %v395_v17, %v2747_v57  ;;  %v437_v57 = vsel %vm436_vm1, %v404_v62, -inf  ;;  %v458_v17 = vsel %vm436_vm1, %v407_v6, -inf  ;;  %v445_v50 = vrot.slane %v444_v13, 4 }
 0x137   :  { %2448 = vmatmul.mubr.msk.f32.gmra.mrb[16].mxu1 %vm436_vm1, %v3565_v52  ;;  %v3564_v36 = vmax.f32 %v2964_v43, 0.0  ;;  %v438_v61 = vrot.slane %v437_v57, 4  ;;  %v459_v0 = vrot.slane %v458_v17, 4  ;;  %v486_v62 = vsel %vm436_vm1, %v411_v19, -inf }
 0x138   :  { %v3562_v23 = vmax.f32 %v2970_v46, 0.0  ;;  %v466_v6 = vrot.slane %v465_v59, 4  ;;  %v487_v9 = vrot.slane %v486_v62, 4  ;;  %v446_v15 = vmax.f32 %v444_v13, %v445_v50 }
 0x139   :  { %v439_v19 = vmax.f32 %v437_v57, %v438_v61  ;;  %v460_v18 = vmax.f32 %v458_v17, %v459_v0  ;;  %v502_v50 = vmax.f32 %v500_v7, %v501_v37  ;;  %v495_v57 = vmax.f32 %v493_v10, %v494_v16 }
 0x13a   :  { %2450 = vmatprep.mubr.msk.f32.mxu1 %vm436_vm1, %v3562_v23  ;;  %v451_v23 = vsel %vm436_vm1, %v406_v4, -inf  ;;  %v467_v63 = vmax.f32 %v465_v59, %v466_v6  ;;  %v488_v21 = vmax.f32 %v486_v62, %v487_v9  ;;  %v447_v24 = vrot.slane %v446_v15, 2 }
 0x13b   :  { %2451 = vmatmul.mubr.msk.f32.gmra.mrb[18].mxu1 %vm436_vm1, %v3564_v36  ;;  %v472_v36 = vsel %vm436_vm1, %v409_v12, -inf  ;;  %v452_v3 = vrot.slane %v451_v23, 4  ;;  %v480_v12 = vrot.slane %v479_v1, 4  ;;  %v440_v51 = vrot.slane %v439_v19, 2 }
 0x13c   :  { %v473_v4 = vrot.slane %v472_v36, 4  ;;  %v461_v26 = vrot.slane %v460_v18, 2  ;;  %v468_v17 = vrot.slane %v467_v63, 2  ;;  %v489_v61 = vrot.slane %v488_v21, 2 }
 0x13d   :  { %v453_v52 = vmax.f32 %v451_v23, %v452_v3  ;;  %v481_v5 = vmax.f32 %v479_v1, %v480_v12  ;;  %v516_v23 = vmax.f32 %v514_v14, %v515_v22  ;;  %v441_v59 = vmax.f32 %v439_v19, %v440_v51 }
 0x13e   :  { %v474_v25 = vmax.f32 %v472_v36, %v473_v4  ;;  %v448_v36 = vmax.f32 %v446_v15, %v447_v24  ;;  %v462_v0 = vmax.f32 %v460_v18, %v461_v26  ;;  %v509_v62 = vmax.f32 %v507_v20, %v508_v53 }
 0x13f   :  { %v454_v31 = vrot.slane %v453_v52, 2  ;;  %v482_v27 = vrot.slane %v481_v5, 2  ;;  %v503_v3 = vrot.slane %v502_v50, 2  ;;  %v667_v4 = vsub.s32 1, %v2738_v54 }
 0x140   :  { %v475_v13 = vrot.slane %v474_v25, 2  ;;  %v496_v6 = vrot.slane %v495_v57, 2  ;;  %v517_v37 = vrot.slane %v516_v23, 2  ;;  %v529_v7 = vrot.slane %v528_v30, 4 }
 0x141   :  { %v455_v1 = vmax.f32 %v453_v52, %v454_v31  ;;  %v521_v16 = vsel %vm436_vm1, %v416_v38, -inf  ;;  %v469_v9 = vmax.f32 %v467_v63, %v468_v17  ;;  %v490_v32 = vmax.f32 %v488_v21, %v489_v61 }
 0x142   :  { %v476_v22 = vmax.f32 %v474_v25, %v475_v13  ;;  %v483_v12 = vmax.f32 %v481_v5, %v482_v27  ;;  %v449_v39 = vrot.slane %v448_v36, 1  ;;  %v442_v10 = vrot.slane %v441_v59, 1 }
 0x143   :  { %v463_v51 = vrot.slane %v462_v0, 1  ;;  %v510_v14 = vrot.slane %v509_v62, 2  ;;  %v456_v53 = vrot.slane %v455_v1, 1  ;;  %v504_v52 = vmax.f32 %v502_v50, %v503_v3 }
 0x144   :  { %v522_v15 = vrot.slane %v521_v16, 4  ;;  %v542_v19 = vsel %vm436_vm1, %v419_v47, -inf  ;;  %v497_v18 = vmax.f32 %v495_v57, %v496_v6  ;;  %v518_v20 = vmax.f32 %v516_v23, %v517_v37 }
 0x145   :  { %v530_v33 = vmax.f32 %v528_v30, %v529_v7  ;;  %v3027_v38 = vrot.slane %v2744_v56, %v667_v4  ;;  %v477_v63 = vrot.slane %v476_v22, 1  ;;  %v470_v25 = vrot.slane %v469_v9, 1 }
 0x146   :  { %v491_v5 = vrot.slane %v490_v32, 1  ;;  %v484_v21 = vrot.slane %v483_v12, 1  ;;  %v3029_v24 = vmax.f32 %v448_v36, %v449_v39  ;;  %v3031_v26 = vmax.f32 %v441_v59, %v442_v10 }
 0x147   :  { %v511_v31 = vmax.f32 %v509_v62, %v510_v14  ;;  %v543_v50 = vrot.slane %v542_v19, 4  ;;  %v3033_v13 = vmax.f32 %v462_v0, %v463_v51  ;;  %v3035_v42 = vmax.f32 %v455_v1, %v456_v53 }
 0x148   :  { %v505_v47 = vrot.slane %v504_v52, 1  ;;  %v523_v57 = vmax.f32 %v521_v16, %v522_v15  ;;  %v498_v23 = vrot.slane %v497_v18, 1  ;;  %v519_v17 = vrot.slane %v518_v20, 1 }
 0x149   :  { %v531_v56 = vrot.slane %v530_v33, 2  ;;  %v535_v61 = vsel %vm436_vm1, %v418_v45, -inf  ;;  %v3040_v27 = vmax.f32 %v476_v22, %v477_v63  ;;  %v3042_v30 = vmax.f32 %v469_v9, %v470_v25 }
 0x14a   :  { %v3044_v36 = vmax.f32 %v490_v32, %v491_v5  ;;  %v3046_v59 = vmax.f32 %v483_v12, %v484_v21  ;;  %v512_v0 = vrot.slane %v511_v31, 1  ;;  %v544_v62 = vmax.f32 %v542_v19, %v543_v50 }
 0x14b   :  { %v3573_v1 = vmax.f32 %v2863_v48, 0.0  ;;  %v3574_v4 = vmax.f32 %v2866_v49, 0.0  ;;  %v3054_v6 = vmax.f32 %v504_v52, %v505_v47  ;;  %v524_v45 = vrot.slane %v523_v57, 2 }
 0x14c   :  { %v536_v37 = vrot.slane %v535_v61, 4  ;;  %v3575_v7 = vmax.f32 %v2877_v55, 0.0  ;;  %v3059_v22 = vmax.f32 %v497_v18, %v498_v23  ;;  %v3061_v9 = vmax.f32 %v518_v20, %v519_v17 }
 0x14d   :  { %v556_v3 = vsel %vm436_vm1, %v3573_v1, -inf  ;;  %v549_v44 = vsel %vm436_vm1, %v3574_v4, -inf  ;;  %v532_v32 = vmax.f32 %v530_v33, %v531_v56  ;;  %v3576_v48 = vmax.f32 %v2880_v58, 0.0 }
 0x14e   :  { %v570_v16 = vsel %vm436_vm1, %v3575_v7, -inf  ;;  %v557_v49 = vrot.slane %v556_v3, 4  ;;  %v550_v39 = vrot.slane %v549_v44, 4  ;;  %v3577_v10 = vmax.f32 %v2891_v8, 0.0 }
 0x14f   :  { %v563_v12 = vsel %vm436_vm1, %v3576_v48, -inf  ;;  %v3578_v14 = vmax.f32 %v2894_v11, 0.0  ;;  %v3072_v53 = vmax.f32 %v511_v31, %v512_v0  ;;  %v545_v52 = vrot.slane %v544_v62, 2 }
 0x150   :  { %v584_v51 = vsel %vm436_vm1, %v3577_v10, -inf  ;;  %v571_v15 = vrot.slane %v570_v16, 4  ;;  %v3579_v19 = vmax.f32 %v2908_v28, 0.0  ;;  %v525_v18 = vmax.f32 %v523_v57, %v524_v45 }
 0x151   :  { %v577_v55 = vsel %vm436_vm1, %v3578_v14, -inf  ;;  %v537_v20 = vmax.f32 %v535_v61, %v536_v37  ;;  %v564_v33 = vrot.slane %v563_v12, 4  ;;  %v3580_v63 = vmax.f32 %v2914_v29, 0.0 }
 0x152   :  { %v598_v58 = vsel %vm436_vm1, %v3579_v19, -inf  ;;  %v533_v25 = vrot.slane %v532_v32, 1  ;;  %v585_v5 = vrot.slane %v584_v51, 4  ;;  %v578_v11 = vrot.slane %v577_v55, 4 }
 0x153   :  { %v591_v8 = vsel %vm436_vm1, %v3580_v63, -inf  ;;  %v3581_v21 = vmax.f32 %v2919_v40, 0.0  ;;  %v558_v50 = vmax.f32 %v556_v3, %v557_v49  ;;  %v551_v47 = vmax.f32 %v549_v44, %v550_v39 }
 0x154   :  { %v599_v23 = vrot.slane %v598_v58, 4  ;;  %v3582_v28 = vmax.f32 %v2922_v41, 0.0  ;;  %v546_v17 = vmax.f32 %v544_v62, %v545_v52  ;;  %v572_v56 = vmax.f32 %v570_v16, %v571_v15 }
 0x155   :  { %v612_v31 = vsel %vm436_vm1, %v3581_v21, -inf  ;;  %v592_v61 = vrot.slane %v591_v8, 4  ;;  %v3583_v29 = vmax.f32 %v2933_v60, 0.0  ;;  %v538_v1 = vrot.slane %v537_v20, 2 }
 0x156   :  { %v605_v57 = vsel %vm436_vm1, %v3582_v28, -inf  ;;  %v565_v4 = vmax.f32 %v563_v12, %v564_v33  ;;  %v613_v45 = vrot.slane %v612_v31, 4  ;;  %v3584_v40 = vmax.f32 %v2936_v2, 0.0 }
 0x157   :  { %v626_v0 = vsel %vm436_vm1, %v3583_v29, -inf  ;;  %v526_v44 = vrot.slane %v525_v18, 1  ;;  %v586_v37 = vmax.f32 %v584_v51, %v585_v5  ;;  %v579_v7 = vmax.f32 %v577_v55, %v578_v11 }
 0x158   :  { %v619_v3 = vsel %vm436_vm1, %v3584_v40, -inf  ;;  %v606_v41 = vrot.slane %v605_v57, 4  ;;  %v559_v48 = vrot.slane %v558_v50, 2  ;;  %v552_v49 = vrot.slane %v551_v47, 2 }
 0x159   :  { %v600_v62 = vmax.f32 %v598_v58, %v599_v23  ;;  %v627_v16 = vrot.slane %v626_v0, 4  ;;  %v547_v39 = vrot.slane %v546_v17, 1  ;;  %v573_v10 = vrot.slane %v572_v56, 2 }
 0x15a   :  { %v593_v60 = vmax.f32 %v591_v8, %v592_v61  ;;  %v620_v14 = vrot.slane %v619_v3, 4  ;;  %v3092_v52 = vmax.f32 %v532_v32, %v533_v25  ;;  %v539_v12 = vmax.f32 %v537_v20, %v538_v1 }
 0x15b   :  { %v566_v15 = vrot.slane %v565_v4, 2  ;;  %v614_v19 = vmax.f32 %v612_v31, %v613_v45  ;;  %v3094_v2 = vmax.f32 %v525_v18, %v526_v44  ;;  %v587_v33 = vrot.slane %v586_v37, 2 }
 0x15c   :  { %v580_v63 = vrot.slane %v579_v7, 2  ;;  %v607_v51 = vmax.f32 %v605_v57, %v606_v41  ;;  %v560_v55 = vmax.f32 %v558_v50, %v559_v48  ;;  %v553_v5 = vmax.f32 %v551_v47, %v552_v49 }
 0x15d   :  { %v601_v11 = vrot.slane %v600_v62, 2  ;;  %v628_v21 = vmax.f32 %v626_v0, %v627_v16  ;;  %v3096_v58 = vmax.f32 %v546_v17, %v547_v39  ;;  %v574_v23 = vmax.f32 %v572_v56, %v573_v10 }
 0x15e   :  { %v594_v28 = vrot.slane %v593_v60, 2  ;;  %v621_v8 = vmax.f32 %v619_v3, %v620_v14  ;;  %v540_v61 = vrot.slane %v539_v12, 1  ;;  %v567_v32 = vmax.f32 %v565_v4, %v566_v15 }
 0x15f   :  { %v615_v25 = vrot.slane %v614_v19, 2  ;;  %v3585_v20 = vmax.f32 %v2947_v34, 0.0  ;;  %v588_v31 = vmax.f32 %v586_v37, %v587_v33  ;;  %v581_v29 = vmax.f32 %v579_v7, %v580_v63 }
 0x160   :  { %v608_v1 = vrot.slane %v607_v51, 2  ;;  %v3586_v50 = vmax.f32 %v2950_v35, 0.0  ;;  %v561_v57 = vrot.slane %v560_v55, 1  ;;  %v554_v17 = vrot.slane %v553_v5, 1 }
 0x161   :  { %v640_v18 = vsel %vm436_vm1, %v3585_v20, -inf  ;;  %v602_v0 = vmax.f32 %v600_v62, %v601_v11  ;;  %v629_v56 = vrot.slane %v628_v21, 2  ;;  %v575_v45 = vrot.slane %v574_v23, 1 }
 0x162   :  { %v633_v47 = vsel %vm436_vm1, %v3586_v50, -inf  ;;  %v595_v40 = vmax.f32 %v593_v60, %v594_v28  ;;  %v622_v3 = vrot.slane %v621_v8, 2  ;;  %v641_v4 = vrot.slane %v640_v18, 4 }
 0x163   :  { %v3104_v44 = vmax.f32 %v539_v12, %v540_v61  ;;  %v568_v34 = vrot.slane %v567_v32, 1  ;;  %v616_v41 = vmax.f32 %v614_v19, %v615_v25  ;;  %v634_v48 = vrot.slane %v633_v47, 4 }
 0x164   :  { %v589_v37 = vrot.slane %v588_v31, 1  ;;  %v582_v7 = vrot.slane %v581_v29, 1  ;;  %v609_v49 = vmax.f32 %v607_v51, %v608_v1  ;;  %v3587_v35 = vmax.f32 %v2964_v43, 0.0 }
 0x165   :  { %v3109_v39 = vmax.f32 %v560_v55, %v561_v57  ;;  %v3111_v62 = vmax.f32 %v553_v5, %v554_v17  ;;  %v603_v10 = vrot.slane %v602_v0, 1  ;;  %v630_v60 = vmax.f32 %v628_v21, %v629_v56 }
 0x166   :  { %v654_v16 = vsel %vm436_vm1, %v3587_v35, -inf  ;;  %v3113_v14 = vmax.f32 %v574_v23, %v575_v45  ;;  %v596_v12 = vrot.slane %v595_v40, 1  ;;  %v623_v15 = vmax.f32 %v621_v8, %v622_v3 }
 0x167   :  { %v642_v33 = vmax.f32 %v640_v18, %v641_v4  ;;  %v3115_v19 = vmax.f32 %v567_v32, %v568_v34  ;;  %v617_v63 = vrot.slane %v616_v41, 1  ;;  %v635_v11 = vmax.f32 %v633_v47, %v634_v48 }
 0x168   :  { %v655_v51 = vrot.slane %v654_v16, 4  ;;  %v3117_v43 = vmax.f32 %v588_v31, %v589_v37  ;;  %v3119_v61 = vmax.f32 %v581_v29, %v582_v7  ;;  %v610_v55 = vrot.slane %v609_v49, 1 }
 0x169   :  { %v3122_v21 = vmax.f32 %v602_v0, %v603_v10  ;;  %v631_v23 = vrot.slane %v630_v60, 1  ;;  %v3588_v8 = vmax.f32 %v2970_v46, 0.0  ;;  %v3128_v18 = vmax.f32 %v595_v40, %v596_v12 }
 0x16a   :  { %v624_v1 = vrot.slane %v623_v15, 1  ;;  %v643_v31 = vrot.slane %v642_v33, 2  ;;  %v3130_v29 = vmax.f32 %v616_v41, %v617_v63  ;;  %v636_v47 = vrot.slane %v635_v11, 2 }
 0x16b   :  { %v647_v32 = vsel %vm436_vm1, %v3588_v8, -inf  ;;  %v656_v57 = vmax.f32 %v654_v16, %v655_v51  ;;  %v3132_v0 = vmax.f32 %v609_v49, %v610_v55  ;;  %v3136_v34 = vmax.f32 %v630_v60, %v631_v23 }
 0x16c   :  { %v648_v45 = vrot.slane %v647_v32, 4  ;;  %v3141_v37 = vmax.f32 %v623_v15, %v624_v1  ;;  %v3143_v7 = vmax.f32 %v642_v33, %v643_v31  ;;  %v3146_v16 = vmax.f32 %v635_v11, %v636_v47 }
 0x16d   :  { %v657_v10 = vrot.slane %v656_v57, 2 }
 0x16e   :  { %v3148_v51 = vmax.f32 %v647_v32, %v648_v45 }
 0x16f   :  { %v3157_v31 = vmax.f32 %v656_v57, %v657_v10 }
 0x1d2   :  { %v2407_v28 = vpop.f32.mrb[32].mxu0 }
 0x1d3   :  { %v837_v5 = vadd.f32 %v2407_v28, %v3027_v38  ;;  %v831_v25 = vpop.f32.mrb[33].mxu0 }
 0x1d4   :  { %v832_v20 = vadd.f32 %v831_v25, %v3027_v38 }
 0x1d5   :  { %v991_v50 = vmax.f32 %v837_v5, 0.0 }
 0x1d6   :  { %v990_v17 = vmax.f32 %v832_v20, 0.0  ;;  %v2410_v56 = vpop.f32.mrb[34].mxu0 }
 0x1d7   :  { %v1029_v46 = vsel %vm436_vm1, %v991_v50, -inf  ;;  %v847_v3 = vadd.f32 %v2410_v56, %v3027_v38  ;;  %v841_v4 = vpop.f32.mrb[35].mxu0 }
 0x1d8   :  { %v1030_v40 = vrot.slane %v1029_v46, 4  ;;  %v1022_v48 = vsel %vm436_vm1, %v990_v17, -inf  ;;  %v842_v41 = vadd.f32 %v841_v4, %v3027_v38  ;;  %2461 = vmatprep.mubr.msk.f32.mxu1 %vm436_vm1, %v990_v17 }
 0x1d9   :  { %v1023_v49 = vrot.slane %v1022_v48, 4  ;;  %v993_v35 = vmax.f32 %v847_v3, 0.0  ;;  %2462 = vmatmul.mubr.msk.f32.vlgmr.msra.gmra.mrb[20].mxu1 %vm436_vm1, %v991_v50 }
 0x1da   :  { %v1031_v60 = vmax.f32 %v1029_v46, %v1030_v40  ;;  %v992_v12 = vmax.f32 %v842_v41, 0.0  ;;  %v2413_v63 = vpop.f32.mrb[36].mxu0 }
 0x1db   :  { %v1024_v28 = vmax.f32 %v1022_v48, %v1023_v49  ;;  %v1043_v55 = vsel %vm436_vm1, %v993_v35, -inf  ;;  %v857_v15 = vadd.f32 %v2413_v63, %v3027_v38  ;;  %v851_v5 = vpop.f32.mrb[37].mxu0 }
 0x1dc   :  { %v1032_v33 = vrot.slane %v1031_v60, 2  ;;  %v1044_v25 = vrot.slane %v1043_v55, 4  ;;  %v1036_v23 = vsel %vm436_vm1, %v992_v12, -inf  ;;  %v852_v8 = vadd.f32 %v851_v5, %v3027_v38  ;;  %2464 = vmatprep.mubr.msk.f32.mxu1 %vm436_vm1, %v992_v12 }
 0x1dd   :  { %v1025_v20 = vrot.slane %v1024_v28, 2  ;;  %v1037_v1 = vrot.slane %v1036_v23, 4  ;;  %v995_v32 = vmax.f32 %v857_v15, 0.0  ;;  %2465 = vmatmul.mubr.msk.f32.gmra.mrb[22].mxu1 %vm436_vm1, %v993_v35 }
 0x1de   :  { %v1033_v50 = vmax.f32 %v1031_v60, %v1032_v33  ;;  %v1045_v47 = vmax.f32 %v1043_v55, %v1044_v25  ;;  %v994_v17 = vmax.f32 %v852_v8, 0.0  ;;  %v2416_v49 = vpop.f32.mrb[38].mxu0 }
 0x1df   :  { %v1026_v45 = vmax.f32 %v1024_v28, %v1025_v20  ;;  %v1038_v46 = vmax.f32 %v1036_v23, %v1037_v1  ;;  %v1057_v3 = vsel %vm436_vm1, %v995_v32, -inf  ;;  %v867_v60 = vadd.f32 %v2416_v49, %v3027_v38  ;;  %v861_v12 = vpop.f32.mrb[39].mxu0 }
 0x1e0   :  { %v1034_v4 = vrot.slane %v1033_v50, 1  ;;  %v1046_v40 = vrot.slane %v1045_v47, 2  ;;  %v1058_v48 = vrot.slane %v1057_v3, 4  ;;  %v1050_v41 = vsel %vm436_vm1, %v994_v17, -inf  ;;  %2467 = vmatprep.mubr.msk.f32.mxu1 %vm436_vm1, %v994_v17 }
 0x1e1   :  { %v1027_v35 = vrot.slane %v1026_v45, 1  ;;  %v1039_v57 = vrot.slane %v1038_v46, 2  ;;  %v1051_v10 = vrot.slane %v1050_v41, 4  ;;  %2468 = vmatmul.mubr.msk.f32.gmra.mrb[24].mxu1 %vm436_vm1, %v995_v32  ;;  %v862_v15 = vadd.f32 %v861_v12, %v3027_v38 }
 0x1e2   :  { %v1035_v63 = vmax.f32 %v1033_v50, %v1034_v4  ;;  %v1047_v28 = vmax.f32 %v1045_v47, %v1046_v40  ;;  %v1059_v55 = vmax.f32 %v1057_v3, %v1058_v48  ;;  %v997_v23 = vmax.f32 %v867_v60, 0.0  ;;  %v2419_v56 = vpop.f32.mrb[40].mxu0 }
 0x1e3   :  { %v1028_v5 = vmax.f32 %v1026_v45, %v1027_v35  ;;  %v1040_v33 = vmax.f32 %v1038_v46, %v1039_v57  ;;  %v1052_v25 = vmax.f32 %v1050_v41, %v1051_v10  ;;  %v996_v17 = vmax.f32 %v862_v15, 0.0  ;;  %v871_v3 = vpop.f32.mrb[41].mxu0 }
 0x1e4   :  { %v3167_v8 = vadd.f32 %v1035_v63, %v3029_v24  ;;  %v1048_v20 = vrot.slane %v1047_v28, 1  ;;  %v1060_v1 = vrot.slane %v1059_v55, 2  ;;  %v1071_v47 = vsel %vm436_vm1, %v997_v23, -inf }
 0x1e5   :  { %v3170_v49 = vadd.f32 %v1028_v5, %v3031_v26  ;;  %v1041_v32 = vrot.slane %v1040_v33, 1  ;;  %v1053_v50 = vrot.slane %v1052_v25, 2  ;;  %v1072_v46 = vrot.slane %v1071_v47, 4  ;;  %2470 = vmatprep.mubr.msk.f32.mxu1 %vm436_vm1, %v996_v17 }
 0x1e6   :  { %v1049_v4 = vmax.f32 %v1047_v28, %v1048_v20  ;;  %v1061_v45 = vmax.f32 %v1059_v55, %v1060_v1  ;;  %v1064_v40 = vsel %vm436_vm1, %v996_v17, -inf  ;;  %v877_v35 = vadd.f32 %v2419_v56, %v3027_v38  ;;  %2471 = vmatmul.mubr.msk.f32.gmra.mrb[26].mxu1 %vm436_vm1, %v997_v23  ;;  %v2422_v12 = vpop.f32.mrb[42].mxu0 }
 0x1e7   :  { %v1042_v24 = vmax.f32 %v1040_v33, %v1041_v32  ;;  %v1054_v48 = vmax.f32 %v1052_v25, %v1053_v50  ;;  %v1065_v41 = vrot.slane %v1064_v40, 4  ;;  %v1073_v10 = vmax.f32 %v1071_v47, %v1072_v46  ;;  %v881_v5 = vpop.f32.mrb[43].mxu0 }
 0x1e8   :  { %v3178_v26 = vadd.f32 %v1049_v4, %v3033_v13  ;;  %v1062_v57 = vrot.slane %v1061_v45, 1  ;;  %v872_v60 = vadd.f32 %v871_v3, %v3027_v38  ;;  %v999_v15 = vmax.f32 %v877_v35, 0.0 }
 0x1e9   :  { %v3182_v63 = vadd.f32 %v1042_v24, %v3035_v42  ;;  %v1055_v28 = vrot.slane %v1054_v48, 1  ;;  %v1066_v55 = vmax.f32 %v1064_v40, %v1065_v41  ;;  %v1074_v25 = vrot.slane %v1073_v10, 2 }
 0x1ea   :  { %v1063_v33 = vmax.f32 %v1061_v45, %v1062_v57  ;;  %v998_v56 = vmax.f32 %v872_v60, 0.0  ;;  %v887_v23 = vadd.f32 %v2422_v12, %v3027_v38  ;;  %v1085_v1 = vsel %vm436_vm1, %v999_v15, -inf  ;;  %v2425_v3 = vpop.f32.mrb[0].mxu1 }
 0x1eb   :  { %v1056_v20 = vmax.f32 %v1054_v48, %v1055_v28  ;;  %v1067_v13 = vrot.slane %v1066_v55, 2  ;;  %v882_v17 = vadd.f32 %v881_v5, %v3027_v38  ;;  %v1075_v42 = vmax.f32 %v1073_v10, %v1074_v25  ;;  %v891_v24 = vpop.f32.mrb[1].mxu1 }
 0x1ec   :  { %v3188_v32 = vadd.f32 %v1063_v33, %v3040_v27  ;;  %v1086_v50 = vrot.slane %v1085_v1, 4  ;;  %v1078_v47 = vsel %vm436_vm1, %v998_v56, -inf  ;;  %2473 = vmatprep.mubr.msk.f32.mxu1 %vm436_vm1, %v998_v56  ;;  %v1001_v40 = vmax.f32 %v887_v23, 0.0 }
 0x1ed   :  { %v3193_v4 = vadd.f32 %v1056_v20, %v3042_v30  ;;  %v1068_v45 = vmax.f32 %v1066_v55, %v1067_v13  ;;  %v1079_v46 = vrot.slane %v1078_v47, 4  ;;  %2474 = vmatmul.mubr.msk.f32.gmra.mrb[28].mxu1 %vm436_vm1, %v999_v15  ;;  %v1076_v48 = vrot.slane %v1075_v42, 1 }
 0x1ee   :  { %v1087_v41 = vmax.f32 %v1085_v1, %v1086_v50  ;;  %v1000_v27 = vmax.f32 %v882_v17, 0.0  ;;  %v897_v35 = vadd.f32 %v2425_v3, %v3027_v38  ;;  %v1099_v60 = vsel %vm436_vm1, %v1001_v40, -inf  ;;  %v2428_v1 = vpop.f32.mrb[2].mxu1 }
 0x1ef   :  { %v1069_v57 = vrot.slane %v1068_v45, 1  ;;  %v1080_v10 = vmax.f32 %v1078_v47, %v1079_v46  ;;  %v892_v12 = vadd.f32 %v891_v24, %v3027_v38  ;;  %v1077_v28 = vmax.f32 %v1075_v42, %v1076_v48 }
 0x1f0   :  { %v1088_v30 = vrot.slane %v1087_v41, 2  ;;  %v1100_v5 = vrot.slane %v1099_v60, 4  ;;  %v1092_v55 = vsel %vm436_vm1, %v1000_v27, -inf  ;;  %2476 = vmatprep.mubr.msk.f32.mxu1 %vm436_vm1, %v1000_v27  ;;  %v1003_v56 = vmax.f32 %v897_v35, 0.0 }
 0x1f1   :  { %v1070_v15 = vmax.f32 %v1068_v45, %v1069_v57  ;;  %v1081_v33 = vrot.slane %v1080_v10, 2  ;;  %v1093_v25 = vrot.slane %v1092_v55, 4  ;;  %2477 = vmatmul.mubr.msk.f32.gmra.mrb[30].mxu1 %vm436_vm1, %v1001_v40  ;;  %v1002_v13 = vmax.f32 %v892_v12, 0.0  ;;  %v901_v45 = vpop.f32.mrb[3].mxu1 }
 0x1f2   :  { %v1089_v23 = vmax.f32 %v1087_v41, %v1088_v30  ;;  %v1101_v20 = vmax.f32 %v1099_v60, %v1100_v5  ;;  %v3203_v17 = vadd.f32 %v1077_v28, %v3044_v36  ;;  %v1113_v3 = vsel %vm436_vm1, %v1003_v56, -inf  ;;  %v2431_v12 = vpop.f32.mrb[4].mxu1 }
 0x1f3   :  { %v3206_v42 = vadd.f32 %v1070_v15, %v3046_v59  ;;  %v1082_v50 = vmax.f32 %v1080_v10, %v1081_v33  ;;  %v1094_v47 = vmax.f32 %v1092_v55, %v1093_v25  ;;  %v1114_v48 = vrot.slane %v1113_v3, 4  ;;  %2479 = vmatprep.mubr.msk.f32.mxu1 %vm436_vm1, %v1002_v13  ;;  %v911_v15 = vpop.f32.mrb[5].mxu1 }
 0x1f4   :  { %v1090_v46 = vrot.slane %v1089_v23, 1  ;;  %v1102_v24 = vrot.slane %v1101_v20, 2  ;;  %v1106_v40 = vsel %vm436_vm1, %v1002_v13, -inf  ;;  %v907_v36 = vadd.f32 %v2428_v1, %v3027_v38 }
 0x1f5   :  { %v1083_v41 = vrot.slane %v1082_v50, 1  ;;  %v1095_v27 = vrot.slane %v1094_v47, 2  ;;  %v1107_v35 = vrot.slane %v1106_v40, 4  ;;  %2480 = vmatmul.mubr.msk.f32.gmra.mrb[32].mxu1 %vm436_vm1, %v1003_v56  ;;  %v1115_v10 = vmax.f32 %v1113_v3, %v1114_v48 }
 0x1f6   :  { %v1091_v59 = vmax.f32 %v1089_v23, %v1090_v46  ;;  %v1103_v57 = vmax.f32 %v1101_v20, %v1102_v24  ;;  %v902_v60 = vadd.f32 %v901_v45, %v3027_v38  ;;  %v1005_v55 = vmax.f32 %v907_v36, 0.0  ;;  %v2434_v46 = vpop.f32.mrb[6].mxu1 }
 0x1f7   :  { %v1084_v28 = vmax.f32 %v1082_v50, %v1083_v41  ;;  %v1096_v30 = vmax.f32 %v1094_v47, %v1095_v27  ;;  %v1108_v5 = vmax.f32 %v1106_v40, %v1107_v35  ;;  %v1116_v13 = vrot.slane %v1115_v10, 2 }
 0x1f8   :  { %v3215_v33 = vadd.f32 %v1091_v59, %v3054_v6  ;;  %v1104_v25 = vrot.slane %v1103_v57, 1  ;;  %v1004_v11 = vmax.f32 %v902_v60, 0.0  ;;  %v1127_v20 = vsel %vm436_vm1, %v1005_v55, -inf }
 0x1f9   :  { %v3218_v1 = vadd.f32 %v1084_v28, %v3059_v22  ;;  %v1097_v56 = vrot.slane %v1096_v30, 1  ;;  %v1109_v23 = vrot.slane %v1108_v5, 2  ;;  %v1117_v45 = vmax.f32 %v1115_v10, %v1116_v13  ;;  %v921_v22 = vpop.f32.mrb[7].mxu1 }
 0x1fa   :  { %v1105_v3 = vmax.f32 %v1103_v57, %v1104_v25  ;;  %v1128_v50 = vrot.slane %v1127_v20, 4  ;;  %v1120_v47 = vsel %vm436_vm1, %v1004_v11, -inf  ;;  %2482 = vmatprep.mubr.msk.f32.mxu1 %vm436_vm1, %v1004_v11  ;;  %v917_v40 = vadd.f32 %v2431_v12, %v3027_v38 }
 0x1fb   :  { %v1098_v6 = vmax.f32 %v1096_v30, %v1097_v56  ;;  %v1110_v24 = vmax.f32 %v1108_v5, %v1109_v23  ;;  %v1121_v48 = vrot.slane %v1120_v47, 4  ;;  %2483 = vmatmul.mubr.msk.f32.gmra.mrb[34].mxu1 %vm436_vm1, %v1005_v55  ;;  %v1118_v27 = vrot.slane %v1117_v45, 1  ;;  %v2437_v5 = vpop.f32.mrb[8].mxu1 }
 0x1fc   :  { %v3226_v41 = vadd.f32 %v1105_v3, %v3061_v9  ;;  %v1129_v35 = vmax.f32 %v1127_v20, %v1128_v50  ;;  %v912_v36 = vadd.f32 %v911_v15, %v3027_v38  ;;  %v1007_v10 = vmax.f32 %v917_v40, 0.0  ;;  %v931_v56 = vpop.f32.mrb[9].mxu1 }
 0x1fd   :  { %v3230_v59 = vadd.f32 %v1098_v6, %v3072_v53  ;;  %v1111_v11 = vrot.slane %v1110_v24, 1  ;;  %v1122_v57 = vmax.f32 %v1120_v47, %v1121_v48  ;;  %v1119_v60 = vmax.f32 %v1117_v45, %v1118_v27 }
 0x1fe   :  { %v1130_v28 = vrot.slane %v1129_v35, 2  ;;  %v1006_v30 = vmax.f32 %v912_v36, 0.0  ;;  %v927_v12 = vadd.f32 %v2434_v46, %v3027_v38  ;;  %v1141_v9 = vsel %vm436_vm1, %v1007_v10, -inf }
 0x1ff   :  { %v1112_v55 = vmax.f32 %v1110_v24, %v1111_v11  ;;  %v1123_v25 = vrot.slane %v1122_v57, 2  ;;  %v922_v13 = vadd.f32 %v921_v22, %v3027_v38  ;;  %v3236_v15 = vadd.f32 %v1119_v60, %v3092_v52 }
 0x200   :  { %v1131_v53 = vmax.f32 %v1129_v35, %v1130_v28  ;;  %v1142_v23 = vrot.slane %v1141_v9, 4  ;;  %v1134_v20 = vsel %vm436_vm1, %v1006_v30, -inf  ;;  %2485 = vmatprep.mubr.msk.f32.mxu1 %vm436_vm1, %v1006_v30  ;;  %v1009_v47 = vmax.f32 %v927_v12, 0.0 }
 0x201   :  { %v3241_v3 = vadd.f32 %v1112_v55, %v3094_v2  ;;  %v1124_v45 = vmax.f32 %v1122_v57, %v1123_v25  ;;  %v1135_v50 = vrot.slane %v1134_v20, 4  ;;  %2486 = vmatmul.mubr.msk.f32.gmra.mrb[36].mxu1 %vm436_vm1, %v1007_v10  ;;  %v1008_v24 = vmax.f32 %v922_v13, 0.0  ;;  %v2440_v57 = vpop.f32.mrb[10].mxu1 }
 0x202   :  { %v1132_v46 = vrot.slane %v1131_v53, 1  ;;  %v1143_v6 = vmax.f32 %v1141_v9, %v1142_v23  ;;  %v937_v52 = vadd.f32 %v2437_v5, %v3027_v38  ;;  %v1155_v22 = vsel %vm436_vm1, %v1009_v47, -inf  ;;  %v941_v12 = vpop.f32.mrb[11].mxu1 }
 0x203   :  { %v1125_v48 = vrot.slane %v1124_v45, 1  ;;  %v1136_v40 = vmax.f32 %v1134_v20, %v1135_v50  ;;  %v932_v27 = vadd.f32 %v931_v56, %v3027_v38  ;;  %v1156_v2 = vrot.slane %v1155_v22, 4  ;;  %2488 = vmatprep.mubr.msk.f32.mxu1 %vm436_vm1, %v1008_v24 }
 0x204   :  { %v1133_v35 = vmax.f32 %v1131_v53, %v1132_v46  ;;  %v1144_v36 = vrot.slane %v1143_v6, 2  ;;  %v1148_v11 = vsel %vm436_vm1, %v1008_v24, -inf  ;;  %v1011_v30 = vmax.f32 %v937_v52, 0.0 }
 0x205   :  { %v1126_v10 = vmax.f32 %v1124_v45, %v1125_v48  ;;  %v1137_v60 = vrot.slane %v1136_v40, 2  ;;  %v1149_v28 = vrot.slane %v1148_v11, 4  ;;  %2489 = vmatmul.mubr.msk.f32.gmra.mrb[38].mxu1 %vm436_vm1, %v1009_v47  ;;  %v1157_v25 = vmax.f32 %v1155_v22, %v1156_v2  ;;  %v2443_v47 = vpop.f32.mrb[12].mxu1 }
 0x206   :  { %v3251_v5 = vadd.f32 %v1133_v35, %v3096_v58  ;;  %v1145_v55 = vmax.f32 %v1143_v6, %v1144_v36  ;;  %v1010_v9 = vmax.f32 %v932_v27, 0.0  ;;  %v1169_v23 = vsel %vm436_vm1, %v1011_v30, -inf }
 0x207   :  { %v3254_v13 = vadd.f32 %v1126_v10, %v3104_v44  ;;  %v1138_v56 = vmax.f32 %v1136_v40, %v1137_v60  ;;  %v1150_v53 = vmax.f32 %v1148_v11, %v1149_v28  ;;  %v1158_v45 = vrot.slane %v1157_v25, 2  ;;  %v951_v44 = vpop.f32.mrb[13].mxu1 }
 0x208   :  { %v1146_v20 = vrot.slane %v1145_v55, 1  ;;  %v1170_v50 = vrot.slane %v1169_v23, 4  ;;  %v1162_v46 = vsel %vm436_vm1, %v1010_v9, -inf  ;;  %2491 = vmatprep.mubr.msk.f32.mxu1 %vm436_vm1, %v1010_v9  ;;  %v947_v52 = vadd.f32 %v2440_v57, %v3027_v38 }
 0x209   :  { %3589 = vst [vmem:[#allocation5_spill] sm:$0xff] %v3254_v13  ;;  %v1139_v58 = vrot.slane %v1138_v56, 1  ;;  %v1151_v24 = vrot.slane %v1150_v53, 2  ;;  %v1163_v6 = vrot.slane %v1162_v46, 4  ;;  %2492 = vmatmul.mubr.msk.f32.gmra.mrb[40].mxu1 %vm436_vm1, %v1011_v30  ;;  %v1159_v40 = vmax.f32 %v1157_v25, %v1158_v45  ;;  %v2446_v13 = vpop.f32.mrb[14].mxu1 }
 0x20a   :  { %v1147_v48 = vmax.f32 %v1145_v55, %v1146_v20  ;;  %v1171_v22 = vmax.f32 %v1169_v23, %v1170_v50  ;;  %v942_v27 = vadd.f32 %v941_v12, %v3027_v38  ;;  %v1013_v11 = vmax.f32 %v947_v52, 0.0  ;;  %v961_v23 = vpop.f32.mrb[15].mxu1 }
 0x20b   :  { %v1140_v35 = vmax.f32 %v1138_v56, %v1139_v58  ;;  %v1152_v36 = vmax.f32 %v1150_v53, %v1151_v24  ;;  %v1164_v2 = vmax.f32 %v1162_v46, %v1163_v6  ;;  %v1160_v60 = vrot.slane %v1159_v40, 1  ;;  %v2449_v52 = vpop.f32.mrb[16].mxu1 }
 0x20c   :  { %v3263_v10 = vadd.f32 %v1147_v48, %v3109_v39  ;;  %v1172_v28 = vrot.slane %v1171_v22, 2  ;;  %v1012_v9 = vmax.f32 %v942_v27, 0.0  ;;  %v1183_v25 = vsel %vm436_vm1, %v1013_v11, -inf }
 0x20d   :  { %v3266_v57 = vadd.f32 %v1140_v35, %v3111_v62  ;;  %v1153_v30 = vrot.slane %v1152_v36, 1  ;;  %v1165_v55 = vrot.slane %v1164_v2, 2  ;;  %v1161_v12 = vmax.f32 %v1159_v40, %v1160_v60  ;;  %v971_v35 = vpop.f32.mrb[17].mxu1 }
 0x20e   :  { %v1173_v56 = vmax.f32 %v1171_v22, %v1172_v28  ;;  %v1184_v53 = vrot.slane %v1183_v25, 4  ;;  %v1176_v20 = vsel %vm436_vm1, %v1012_v9, -inf  ;;  %2494 = vmatprep.mubr.msk.f32.mxu1 %vm436_vm1, %v1012_v9  ;;  %v957_v46 = vadd.f32 %v2443_v47, %v3027_v38 }
 0x20f   :  { %v1154_v39 = vmax.f32 %v1152_v36, %v1153_v30  ;;  %v1166_v45 = vmax.f32 %v1164_v2, %v1165_v55  ;;  %v1177_v50 = vrot.slane %v1176_v20, 4  ;;  %2495 = vmatmul.mubr.msk.f32.gmra.mrb[42].mxu1 %vm436_vm1, %v1013_v11  ;;  %v3274_v62 = vadd.f32 %v1161_v12, %v3113_v14 }
 0x210   :  { %v1174_v58 = vrot.slane %v1173_v56, 1  ;;  %v1185_v24 = vmax.f32 %v1183_v25, %v1184_v53  ;;  %v952_v6 = vadd.f32 %v951_v44, %v3027_v38  ;;  %v1015_v27 = vmax.f32 %v957_v46, 0.0 }
 0x211   :  { %v3278_v48 = vadd.f32 %v1154_v39, %v3115_v19  ;;  %v1167_v40 = vrot.slane %v1166_v45, 1  ;;  %v1178_v22 = vmax.f32 %v1176_v20, %v1177_v50  ;;  %v967_v11 = vadd.f32 %v2446_v13, %v3027_v38  ;;  %v2452_v39 = vpop.f32.mrb[18].mxu1 }
 0x212   :  { %v1175_v36 = vmax.f32 %v1173_v56, %v1174_v58  ;;  %v1186_v2 = vrot.slane %v1185_v24, 2  ;;  %v1014_v47 = vmax.f32 %v952_v6, 0.0  ;;  %v1197_v28 = vsel %vm436_vm1, %v1015_v27, -inf }
 0x213   :  { %v1168_v60 = vmax.f32 %v1166_v45, %v1167_v40  ;;  %v1179_v14 = vrot.slane %v1178_v22, 2  ;;  %v962_v9 = vadd.f32 %v961_v23, %v3027_v38  ;;  %v1198_v30 = vrot.slane %v1197_v28, 4 }
 0x214   :  { %v3284_v44 = vadd.f32 %v1175_v36, %v3117_v43  ;;  %v1187_v19 = vmax.f32 %v1185_v24, %v1186_v2  ;;  %v1190_v55 = vsel %vm436_vm1, %v1014_v47, -inf  ;;  %2497 = vmatprep.mubr.msk.f32.mxu1 %vm436_vm1, %v1014_v47  ;;  %v1017_v56 = vmax.f32 %v967_v11, 0.0  ;;  %v981_v24 = vpop.f32.mrb[19].mxu1 }
 0x215   :  { %v3289_v25 = vadd.f32 %v1168_v60, %v3119_v61  ;;  %v1180_v12 = vmax.f32 %v1178_v22, %v1179_v14  ;;  %v1191_v13 = vrot.slane %v1190_v55, 4  ;;  %2498 = vmatmul.mubr.msk.f32.gmra.mrb[44].mxu1 %vm436_vm1, %v1015_v27  ;;  %v1199_v20 = vmax.f32 %v1197_v28, %v1198_v30 }
 0x216   :  { %v1188_v53 = vrot.slane %v1187_v19, 1  ;;  %v1016_v23 = vmax.f32 %v962_v9, 0.0  ;;  %v977_v43 = vadd.f32 %v2449_v52, %v3027_v38  ;;  %v1211_v46 = vsel %vm436_vm1, %v1017_v56, -inf }
 0x217   :  { %v1181_v45 = vrot.slane %v1180_v12, 1  ;;  %v1192_v50 = vmax.f32 %v1190_v55, %v1191_v13  ;;  %v972_v58 = vadd.f32 %v971_v35, %v3027_v38  ;;  %v1200_v6 = vrot.slane %v1199_v20, 2 }
 0x218   :  { %v1189_v61 = vmax.f32 %v1187_v19, %v1188_v53  ;;  %v1212_v40 = vrot.slane %v1211_v46, 4  ;;  %v1204_v22 = vsel %vm436_vm1, %v1016_v23, -inf  ;;  %2500 = vmatprep.mubr.msk.f32.mxu1 %vm436_vm1, %v1016_v23  ;;  %v1019_v47 = vmax.f32 %v977_v43, 0.0 }
 0x219   :  { %v1182_v27 = vmax.f32 %v1180_v12, %v1181_v45  ;;  %v1193_v36 = vrot.slane %v1192_v50, 2  ;;  %v1205_v2 = vrot.slane %v1204_v22, 4  ;;  %2501 = vmatmul.mubr.msk.f32.gmra.mrb[46].mxu1 %vm436_vm1, %v1017_v56  ;;  %v1201_v52 = vmax.f32 %v1199_v20, %v1200_v6 }
 0x21a   :  { %v1213_v11 = vmax.f32 %v1211_v46, %v1212_v40  ;;  %v1018_v60 = vmax.f32 %v972_v58, 0.0  ;;  %v987_v14 = vadd.f32 %v2452_v39, %v3027_v38  ;;  %v1225_v19 = vsel %vm436_vm1, %v1019_v47, -inf }
 0x21b   :  { %v3300_v35 = vadd.f32 %v1182_v27, %v3128_v18  ;;  %v1194_v28 = vmax.f32 %v1192_v50, %v1193_v36  ;;  %v1206_v9 = vmax.f32 %v1204_v22, %v1205_v2  ;;  %v1202_v30 = vrot.slane %v1201_v52, 1 }
 0x21c   :  { %v1214_v55 = vrot.slane %v1213_v11, 2  ;;  %v1226_v12 = vrot.slane %v1225_v19, 4  ;;  %v1218_v13 = vsel %vm436_vm1, %v1018_v60, -inf  ;;  %2503 = vmatprep.mubr.msk.f32.mxu1 %vm436_vm1, %v1018_v60  ;;  %v1021_v23 = vmax.f32 %v987_v14, 0.0 }
 0x21d   :  { %v1195_v56 = vrot.slane %v1194_v28, 1  ;;  %v1207_v53 = vrot.slane %v1206_v9, 2  ;;  %v1219_v20 = vrot.slane %v1218_v13, 4  ;;  %2504 = vmatmul.mubr.msk.f32.gmra.mrb[48].mxu1 %vm436_vm1, %v1019_v47  ;;  %v1203_v43 = vmax.f32 %v1201_v52, %v1202_v30 }
 0x21e   :  { %v1215_v18 = vmax.f32 %v1213_v11, %v1214_v55  ;;  %v1227_v39 = vmax.f32 %v1225_v19, %v1226_v12  ;;  %v982_v45 = vadd.f32 %v981_v24, %v3027_v38  ;;  %v1239_v6 = vsel %vm436_vm1, %v1021_v23, -inf }
 0x21f   :  { %v1196_v50 = vmax.f32 %v1194_v28, %v1195_v56  ;;  %v1208_v46 = vmax.f32 %v1206_v9, %v1207_v53  ;;  %v1220_v58 = vmax.f32 %v1218_v13, %v1219_v20  ;;  %v3309_v40 = vadd.f32 %v1203_v43, %v3130_v29 }
 0x220   :  { %v1216_v22 = vrot.slane %v1215_v18, 1  ;;  %v1228_v27 = vrot.slane %v1227_v39, 2  ;;  %v1240_v36 = vrot.slane %v1239_v6, 4  ;;  %v1020_v11 = vmax.f32 %v982_v45, 0.0 }
 0x221   :  { %v3312_v2 = vadd.f32 %v1196_v50, %v3132_v0  ;;  %v1209_v47 = vrot.slane %v1208_v46, 1  ;;  %v1221_v52 = vrot.slane %v1220_v58, 2  ;;  %v3315_v24 = vadd.f32 %v1189_v61, %v3122_v21 }
 0x222   :  { %v1217_v60 = vmax.f32 %v1215_v18, %v1216_v22  ;;  %v1229_v14 = vmax.f32 %v1227_v39, %v1228_v27  ;;  %v1241_v38 = vmax.f32 %v1239_v6, %v1240_v36  ;;  %v638_v28 = vrot.slane %v3146_v16, 1  ;;  %2506 = vmatprep.mubr.msk.f32.mxu1 %vm436_vm1, %v1020_v11 }
 0x223   :  { %v1210_v9 = vmax.f32 %v1208_v46, %v1209_v47  ;;  %v1222_v29 = vmax.f32 %v1220_v58, %v1221_v52  ;;  %v1232_v19 = vsel %vm436_vm1, %v1020_v11, -inf  ;;  %2507 = vmatmul.mubr.msk.f32.gmra.mrb[50].mxu1 %vm436_vm1, %v1021_v23  ;;  %v3590_v13 = vrot.slane %v3143_v7, 1 }
 0x224   :  { %v3321_v0 = vadd.f32 %v1217_v60, %v3136_v34  ;;  %v1230_v30 = vrot.slane %v1229_v14, 1  ;;  %v1242_v55 = vrot.slane %v1241_v38, 2  ;;  %v1233_v12 = vrot.slane %v1232_v19, 4  ;;  %v1897_v60 = vld [vmem:[%s3554_s4 + $0x8] sm:$0xff] }
 0x225   :  { %v646_v21 = vmax.f32 %v3143_v7, %v3590_v13  ;;  %v659_v61 = vrot.slane %v3157_v31, 1  ;;  %v3329_v56 = vadd.f32 %v1210_v9, %v3141_v37  ;;  %v1223_v53 = vrot.slane %v1222_v29, 1 }
 0x226   :  { %v3591_v20 = vrot.slane %v3148_v51, 2  ;;  %v1231_v43 = vmax.f32 %v1229_v14, %v1230_v30  ;;  %v1243_v18 = vmax.f32 %v1241_v38, %v1242_v55  ;;  %v1234_v39 = vmax.f32 %v1232_v19, %v1233_v12  ;;  %v1899_v38 = vld [vmem:[%s3554_s4 + $0x18] sm:$0xff] }
 0x227   :  { %v639_v45 = vmax.f32 %v3146_v16, %v638_v28  ;;  %v1224_v23 = vmax.f32 %v1222_v29, %v1223_v53  ;;  %v660_v37 = vmax.f32 %v3157_v31, %v659_v61  ;;  %v1896_v16 = vld [vmem:[%s3554_s4] sm:$0xff]  ;;  %v1898_v31 = vld [vmem:[%s3554_s4 + $0x10] sm:$0xff]  ;;  %v1285_v9 = vsub.s32 2, %v2738_v54 }
 0x228   :  { %v651_v34 = vmax.f32 %v3148_v51, %v3591_v20  ;;  %v3335_v50 = vadd.f32 %v1231_v43, %v646_v21  ;;  %v1244_v46 = vrot.slane %v1243_v18, 1  ;;  %v1235_v7 = vrot.slane %v1234_v39, 2  ;;  %v2586_v29 = vld [vmem:[%s3553_s3] sm:$0x7] }
 0x229   :  { %v3337_v58 = vadd.f32 %v1224_v23, %v639_v45  ;;  %v2555_v14 = vpack.c.bf16 %v1897_v60, %v1896_v16  ;;  %v2559_v28 = vpack.c.bf16 %v1899_v38, %v1898_v31  ;;  %v3360_v19 = vrot.slane %v2586_v29, %v1285_v9 }
 0x22a   :  { %v652_v6 = vrot.slane %v651_v34, 1  ;;  %v1245_v22 = vmax.f32 %v1243_v18, %v1244_v46  ;;  %v1236_v27 = vmax.f32 %v1234_v39, %v1235_v7 }
 0x22b   :  { %2556 = vmatprep.subr.bf16.mxu0 %v2555_v14 }
 0x22c   :  { %v1237_v36 = vrot.slane %v1236_v27, 1  ;;  %v3340_v47 = vadd.f32 %v1245_v22, %v660_v37  ;;  %v653_v51 = vmax.f32 %v651_v34, %v652_v6  ;;  %2558 = vmatpush3.bf16.msra.mxu0 %v2555_v14 }
 0x22d   :  { %2560 = vmatprep.subr.bf16.mxu0 %v2559_v28 }
 0x22e   :  { %v1238_v52 = vmax.f32 %v1236_v27, %v1237_v36 }
 0x230   :  { %v3342_v11 = vadd.f32 %v1238_v52, %v653_v51  ;;  %2562 = vmatpush3.bf16.msra.mxu0 %v2559_v28 }
 0x2ac   :  { %v2463_v30 = vpop.f32.mrb[20].mxu1 }
 0x2ad   :  { %v1455_v55 = vadd.f32 %v2463_v30, %v3360_v19  ;;  %v1449_v12 = vpop.f32.mrb[21].mxu1 }
 0x2ae   :  { %v1450_v13 = vadd.f32 %v1449_v12, %v3360_v19 }
 0x2af   :  { %v1609_v21 = vmax.f32 %v1455_v55, 0.0 }
 0x2b0   :  { %v1608_v61 = vmax.f32 %v1450_v13, 0.0  ;;  %v2466_v53 = vpop.f32.mrb[22].mxu1 }
 0x2b1   :  { %v1647_v20 = vsel %vm436_vm1, %v1609_v21, -inf  ;;  %v1465_v34 = vadd.f32 %v2466_v53, %v3360_v19  ;;  %v1459_v54 = vpop.f32.mrb[23].mxu1 }
 0x2b2   :  { %v1648_v43 = vrot.slane %v1647_v20, 4  ;;  %v1640_v18 = vsel %vm436_vm1, %v1608_v61, -inf  ;;  %v1460_v39 = vadd.f32 %v1459_v54, %v3360_v19 }
 0x2b3   :  { %v1641_v45 = vrot.slane %v1640_v18, 4  ;;  %v1611_v23 = vmax.f32 %v1465_v34, 0.0 }
 0x2b4   :  { %v1649_v46 = vmax.f32 %v1647_v20, %v1648_v43  ;;  %v1610_v7 = vmax.f32 %v1460_v39, 0.0  ;;  %v2469_v37 = vpop.f32.mrb[24].mxu1 }
 0x2b5   :  { %v1642_v6 = vmax.f32 %v1640_v18, %v1641_v45  ;;  %v1661_v22 = vsel %vm436_vm1, %v1611_v23, -inf  ;;  %v1475_v27 = vadd.f32 %v2469_v37, %v3360_v19  ;;  %v1469_v36 = vpop.f32.mrb[25].mxu1 }
 0x2b6   :  { %v1650_v51 = vrot.slane %v1649_v46, 2  ;;  %v1662_v52 = vrot.slane %v1661_v22, 4  ;;  %v1654_v16 = vsel %vm436_vm1, %v1610_v7, -inf  ;;  %v1470_v60 = vadd.f32 %v1469_v36, %v3360_v19 }
 0x2b7   :  { %v1643_v14 = vrot.slane %v1642_v6, 2  ;;  %v1655_v31 = vrot.slane %v1654_v16, 4  ;;  %v1613_v38 = vmax.f32 %v1475_v27, 0.0 }
 0x2b8   :  { %v1651_v28 = vmax.f32 %v1649_v46, %v1650_v51  ;;  %v1663_v9 = vmax.f32 %v1661_v22, %v1662_v52  ;;  %v1612_v29 = vmax.f32 %v1470_v60, 0.0 }
 0x2b9   :  { %v1644_v30 = vmax.f32 %v1642_v6, %v1643_v14  ;;  %v1656_v55 = vmax.f32 %v1654_v16, %v1655_v31  ;;  %v1675_v12 = vsel %vm436_vm1, %v1613_v38, -inf  ;;  %v2472_v20 = vpop.f32.mrb[26].mxu1 }
 0x2ba   :  { %v1652_v13 = vrot.slane %v1651_v28, 1  ;;  %v1664_v21 = vrot.slane %v1663_v9, 2  ;;  %v1676_v61 = vrot.slane %v1675_v12, 4  ;;  %v1668_v53 = vsel %vm436_vm1, %v1612_v29, -inf  ;;  %v1479_v39 = vpop.f32.mrb[27].mxu1 }
 0x2bb   :  { %v1645_v34 = vrot.slane %v1644_v30, 1  ;;  %v1657_v54 = vrot.slane %v1656_v55, 2  ;;  %v1669_v43 = vrot.slane %v1668_v53, 4  ;;  %v1485_v18 = vadd.f32 %v2472_v20, %v3360_v19 }
 0x2bc   :  { %v1653_v45 = vmax.f32 %v1651_v28, %v1652_v13  ;;  %v1665_v23 = vmax.f32 %v1663_v9, %v1664_v21  ;;  %v1677_v46 = vmax.f32 %v1675_v12, %v1676_v61  ;;  %v1480_v7 = vadd.f32 %v1479_v39, %v3360_v19 }
 0x2bd   :  { %v1646_v37 = vmax.f32 %v1644_v30, %v1645_v34  ;;  %v1658_v6 = vmax.f32 %v1656_v55, %v1657_v54  ;;  %v1670_v22 = vmax.f32 %v1668_v53, %v1669_v43  ;;  %v1615_v27 = vmax.f32 %v1485_v18, 0.0 }
 0x2be   :  { %v1865_v36 = vadd.f32 %v1653_v45, %v3167_v8  ;;  %v1666_v51 = vrot.slane %v1665_v23, 1  ;;  %v1678_v52 = vrot.slane %v1677_v46, 2  ;;  %v1614_v16 = vmax.f32 %v1480_v7, 0.0 }
 0x2bf   :  { %v1864_v60 = vadd.f32 %v1646_v37, %v3170_v49  ;;  %v1659_v14 = vrot.slane %v1658_v6, 1  ;;  %v1671_v31 = vrot.slane %v1670_v22, 2  ;;  %v1689_v38 = vsel %vm436_vm1, %v1615_v27, -inf }
 0x2c0   :  { %v1667_v28 = vmax.f32 %v1665_v23, %v1666_v51  ;;  %v1679_v9 = vmax.f32 %v1677_v46, %v1678_v52  ;;  %v1690_v29 = vrot.slane %v1689_v38, 4  ;;  %v1682_v30 = vsel %vm436_vm1, %v1614_v16, -inf  ;;  %v2475_v55 = vpop.f32.mrb[28].mxu1 }
 0x2c1   :  { %v1940_v12 = vsel %vm1939_vm2, %v1865_v36, %v1864_v60  ;;  %v1660_v13 = vmax.f32 %v1658_v6, %v1659_v14  ;;  %v1672_v8 = vmax.f32 %v1670_v22, %v1671_v31  ;;  %v1683_v21 = vrot.slane %v1682_v30, 4  ;;  %v1489_v61 = vpop.f32.mrb[29].mxu1 }
 0x2c2   :  { %v1867_v53 = vadd.f32 %v1667_v28, %v3178_v26  ;;  %v1680_v20 = vrot.slane %v1679_v9, 1  ;;  %v1691_v49 = vmax.f32 %v1689_v38, %v1690_v29  ;;  %v1495_v34 = vadd.f32 %v2475_v55, %v3360_v19 }
 0x2c3   :  { %v1866_v54 = vadd.f32 %v1660_v13, %v3182_v63  ;;  %v1673_v43 = vrot.slane %v1672_v8, 1  ;;  %v1684_v18 = vmax.f32 %v1682_v30, %v1683_v21  ;;  %v1490_v39 = vadd.f32 %v1489_v61, %v3360_v19 }
 0x2c4   :  { %v1681_v45 = vmax.f32 %v1679_v9, %v1680_v20  ;;  %v1692_v23 = vrot.slane %v1691_v49, 2  ;;  %v1617_v46 = vmax.f32 %v1495_v34, 0.0  ;;  %v2478_v7 = vpop.f32.mrb[30].mxu1 }
 0x2c5   :  { %v1942_v37 = vsel %vm1941_vm3, %v1866_v54, %v1940_v12  ;;  %v1674_v6 = vmax.f32 %v1672_v8, %v1673_v43  ;;  %v1685_v22 = vrot.slane %v1684_v18, 2  ;;  %v1616_v26 = vmax.f32 %v1490_v39, 0.0  ;;  %v1499_v27 = vpop.f32.mrb[31].mxu1 }
 0x2c6   :  { %v3387_v36 = vadd.f32 %v1681_v45, %v3188_v32  ;;  %v1693_v51 = vmax.f32 %v1691_v49, %v1692_v23  ;;  %v1703_v63 = vsel %vm436_vm1, %v1617_v46, -inf  ;;  %v1505_v52 = vadd.f32 %v2478_v7, %v3360_v19 }
 0x2c7   :  { %v1868_v16 = vadd.f32 %v1674_v6, %v3193_v4  ;;  %v1686_v60 = vmax.f32 %v1684_v18, %v1685_v22  ;;  %v1704_v14 = vrot.slane %v1703_v63, 4  ;;  %v1696_v31 = vsel %vm436_vm1, %v1616_v26, -inf }
 0x2c8   :  { %v1694_v38 = vrot.slane %v1693_v51, 1  ;;  %v1697_v28 = vrot.slane %v1696_v31, 4  ;;  %v1619_v9 = vmax.f32 %v1505_v52, 0.0  ;;  %v1500_v29 = vadd.f32 %v1499_v27, %v3360_v19  ;;  %v2481_v30 = vpop.f32.mrb[32].mxu1 }
 0x2c9   :  { %v1687_v55 = vrot.slane %v1686_v60, 1  ;;  %v1705_v32 = vmax.f32 %v1703_v63, %v1704_v14  ;;  %v1515_v12 = vadd.f32 %v2481_v30, %v3360_v19  ;;  %v1509_v13 = vpop.f32.mrb[33].mxu1  ;;  %v1944_v8 = vsel %vm1943_vm4, %v1867_v53, %v1942_v37 }
 0x2ca   :  { %v1695_v21 = vmax.f32 %v1693_v51, %v1694_v38  ;;  %v1698_v61 = vmax.f32 %v1696_v31, %v1697_v28  ;;  %v1717_v4 = vsel %vm436_vm1, %v1619_v9, -inf  ;;  %v1618_v20 = vmax.f32 %v1500_v29, 0.0 }
 0x2cb   :  { %v1688_v49 = vmax.f32 %v1686_v60, %v1687_v55  ;;  %v1706_v34 = vrot.slane %v1705_v32, 2  ;;  %v1718_v54 = vrot.slane %v1717_v4, 4  ;;  %v1621_v43 = vmax.f32 %v1515_v12, 0.0 }
 0x2cc   :  { %v1699_v18 = vrot.slane %v1698_v61, 2  ;;  %v1710_v39 = vsel %vm436_vm1, %v1618_v20, -inf  ;;  %v1510_v45 = vadd.f32 %v1509_v13, %v3360_v19  ;;  %v3400_v23 = vadd.f32 %v1695_v21, %v3203_v17 }
 0x2cd   :  { %v3403_v46 = vadd.f32 %v1688_v49, %v3206_v42  ;;  %v1707_v53 = vmax.f32 %v1705_v32, %v1706_v34  ;;  %v1719_v7 = vmax.f32 %v1717_v4, %v1718_v54  ;;  %v1711_v37 = vrot.slane %v1710_v39, 4 }
 0x2ce   :  { %v1700_v6 = vmax.f32 %v1698_v61, %v1699_v18  ;;  %v1731_v22 = vsel %vm436_vm1, %v1621_v43, -inf  ;;  %v1620_v26 = vmax.f32 %v1510_v45, 0.0  ;;  %v2484_v27 = vpop.f32.mrb[34].mxu1  ;;  %v1946_v51 = vsel %vm1945_vm5, %v1868_v16, %v1944_v8 }
 0x2cf   :  { %v1708_v63 = vrot.slane %v1707_v53, 1  ;;  %v1720_v52 = vrot.slane %v1719_v7, 2  ;;  %v1712_v60 = vmax.f32 %v1710_v39, %v1711_v37  ;;  %v1732_v14 = vrot.slane %v1731_v22, 4  ;;  %v1519_v17 = vpop.f32.mrb[35].mxu1 }
 0x2d0   :  { %v1701_v31 = vrot.slane %v1700_v6, 1  ;;  %v1724_v42 = vsel %vm436_vm1, %v1620_v26, -inf  ;;  %v1525_v38 = vadd.f32 %v2484_v27, %v3360_v19  ;;  %v1520_v28 = vadd.f32 %v1519_v17, %v3360_v19 }
 0x2d1   :  { %v1709_v9 = vmax.f32 %v1707_v53, %v1708_v63  ;;  %v1721_v29 = vmax.f32 %v1719_v7, %v1720_v52  ;;  %v1713_v30 = vrot.slane %v1712_v60, 2  ;;  %v1733_v55 = vmax.f32 %v1731_v22, %v1732_v14 }
 0x2d2   :  { %v1702_v32 = vmax.f32 %v1700_v6, %v1701_v31  ;;  %v1725_v16 = vrot.slane %v1724_v42, 4  ;;  %v1623_v12 = vmax.f32 %v1525_v38, 0.0  ;;  %v1622_v13 = vmax.f32 %v1520_v28, 0.0 }
 0x2d3   :  { %v1873_v8 = vadd.f32 %v1709_v9, %v3215_v33  ;;  %v1722_v21 = vrot.slane %v1721_v29, 1  ;;  %v1714_v61 = vmax.f32 %v1712_v60, %v1713_v30  ;;  %v1734_v4 = vrot.slane %v1733_v55, 2 }
 0x2d4   :  { %v1872_v20 = vadd.f32 %v1702_v32, %v3218_v1  ;;  %v1726_v49 = vmax.f32 %v1724_v42, %v1725_v16  ;;  %v1745_v34 = vsel %vm436_vm1, %v1623_v12, -inf  ;;  %v1738_v54 = vsel %vm436_vm1, %v1622_v13, -inf  ;;  %v2487_v43 = vpop.f32.mrb[36].mxu1 }
 0x2d5   :  { %v1723_v18 = vmax.f32 %v1721_v29, %v1722_v21  ;;  %v1715_v39 = vrot.slane %v1714_v61, 1  ;;  %v1735_v45 = vmax.f32 %v1733_v55, %v1734_v4  ;;  %v1746_v53 = vrot.slane %v1745_v34, 4  ;;  %v1529_v7 = vpop.f32.mrb[37].mxu1 }
 0x2d6   :  { %v1953_v37 = vsel %vm1939_vm2, %v1873_v8, %v1872_v20  ;;  %v1727_v6 = vrot.slane %v1726_v49, 2  ;;  %v1739_v33 = vrot.slane %v1738_v54, 4  ;;  %v1535_v22 = vadd.f32 %v2487_v43, %v3360_v19 }
 0x2d7   :  { %v3417_v26 = vadd.f32 %v1723_v18, %v3226_v41  ;;  %v1716_v1 = vmax.f32 %v1714_v61, %v1715_v39  ;;  %v1736_v27 = vrot.slane %v1735_v45, 1  ;;  %v1747_v63 = vmax.f32 %v1745_v34, %v1746_v53 }
 0x2d8   :  { %v1728_v52 = vmax.f32 %v1726_v49, %v1727_v6  ;;  %v1740_v60 = vmax.f32 %v1738_v54, %v1739_v33  ;;  %v1625_v14 = vmax.f32 %v1535_v22, 0.0  ;;  %v1530_v17 = vadd.f32 %v1529_v7, %v3360_v19  ;;  %v2490_v31 = vpop.f32.mrb[38].mxu1 }
 0x2d9   :  { %v1874_v42 = vadd.f32 %v1716_v1, %v3230_v59  ;;  %v1737_v38 = vmax.f32 %v1735_v45, %v1736_v27  ;;  %v1748_v28 = vrot.slane %v1747_v63, 2  ;;  %v1948_v9 = vsel %vm1947_vm6, %v3387_v36, %v1946_v51  ;;  %v1539_v29 = vpop.f32.mrb[39].mxu1 }
 0x2da   :  { %v1729_v30 = vrot.slane %v1728_v52, 1  ;;  %v1741_v41 = vrot.slane %v1740_v60, 2  ;;  %v1759_v55 = vsel %vm436_vm1, %v1625_v14, -inf  ;;  %v1624_v32 = vmax.f32 %v1530_v17, 0.0 }
 0x2db   :  { %v3425_v16 = vsel %vm1941_vm3, %v1874_v42, %v1953_v37  ;;  %v3428_v12 = vadd.f32 %v1737_v38, %v3236_v15  ;;  %v1749_v13 = vmax.f32 %v1747_v63, %v1748_v28  ;;  %v1760_v8 = vrot.slane %v1759_v55, 4  ;;  %v3592_v63 = vld [vmem:[#allocation5_spill] sm:$0xff] }
 0x2dc   :  { %v1730_v59 = vmax.f32 %v1728_v52, %v1729_v30  ;;  %v1742_v21 = vmax.f32 %v1740_v60, %v1741_v41  ;;  %v1752_v61 = vsel %vm436_vm1, %v1624_v32, -inf  ;;  %v1950_v36 = vsel %vm1949_vm7, %v3403_v46, %v1948_v9  ;;  %v2493_v51 = vpop.f32.mrb[40].mxu1 }
 0x2dd   :  { %v1750_v4 = vrot.slane %v1749_v13, 1  ;;  %v1761_v20 = vmax.f32 %v1759_v55, %v1760_v8  ;;  %v1753_v49 = vrot.slane %v1752_v61, 4  ;;  %v1952_v34 = vsel %vm1951_vm8, %v3400_v23, %v1950_v36  ;;  %v1549_v54 = vpop.f32.mrb[41].mxu1 }
 0x2de   :  { %v3436_v15 = vadd.f32 %v1730_v59, %v3241_v3  ;;  %v1743_v43 = vrot.slane %v1742_v21, 1  ;;  %2517 = vmatprep.mubr.msk.f32.mxu0 %vm436_vm1, %v1952_v34  ;;  %v1545_v18 = vadd.f32 %v2490_v31, %v3360_v19  ;;  %v1540_v39 = vadd.f32 %v1539_v29, %v3360_v19 }
 0x2df   :  { %v1751_v45 = vmax.f32 %v1749_v13, %v1750_v4  ;;  %v1762_v46 = vrot.slane %v1761_v20, 2  ;;  %v1754_v53 = vmax.f32 %v1752_v61, %v1753_v49  ;;  %v1555_v7 = vadd.f32 %v2493_v51, %v3360_v19 }
 0x2e0   :  { %v1744_v37 = vmax.f32 %v1742_v21, %v1743_v43  ;;  %v1627_v6 = vmax.f32 %v1545_v18, 0.0  ;;  %v1626_v33 = vmax.f32 %v1540_v39, 0.0  ;;  %v1550_v23 = vadd.f32 %v1549_v54, %v3360_v19 }
 0x2e1   :  { %v3444_v3 = vadd.f32 %v1751_v45, %v3251_v5  ;;  %v1763_v22 = vmax.f32 %v1761_v20, %v1762_v46  ;;  %v1755_v1 = vrot.slane %v1754_v53, 2  ;;  %v1629_v27 = vmax.f32 %v1555_v7, 0.0 }
 0x2e2   :  { %v3447_v52 = vadd.f32 %v1744_v37, %v3592_v63  ;;  %v1773_v60 = vsel %vm436_vm1, %v1627_v6, -inf  ;;  %v1766_v14 = vsel %vm436_vm1, %v1626_v33, -inf  ;;  %v1628_v17 = vmax.f32 %v1550_v23, 0.0  ;;  %v2496_v31 = vpop.f32.mrb[42].mxu1 }
 0x2e3   :  { %v1764_v42 = vrot.slane %v1763_v22, 1  ;;  %v1756_v38 = vmax.f32 %v1754_v53, %v1755_v1  ;;  %v1774_v28 = vrot.slane %v1773_v60, 4  ;;  %v1767_v9 = vrot.slane %v1766_v14, 4  ;;  %v1559_v29 = vpop.f32.mrb[43].mxu1 }
 0x2e4   :  { %v1787_v5 = vsel %vm436_vm1, %v1629_v27, -inf  ;;  %v1780_v30 = vsel %vm436_vm1, %v1628_v17, -inf  ;;  %v1565_v41 = vadd.f32 %v2496_v31, %v3360_v19  ;;  %v1560_v55 = vadd.f32 %v1559_v29, %v3360_v19 }
 0x2e5   :  { %v1765_v32 = vmax.f32 %v1763_v22, %v1764_v42  ;;  %v1757_v13 = vrot.slane %v1756_v38, 1  ;;  %v1775_v8 = vmax.f32 %v1773_v60, %v1774_v28  ;;  %v1768_v59 = vmax.f32 %v1766_v14, %v1767_v9 }
 0x2e6   :  { %v1788_v21 = vrot.slane %v1787_v5, 4  ;;  %v1781_v61 = vrot.slane %v1780_v30, 4  ;;  %v1631_v36 = vmax.f32 %v1565_v41, 0.0  ;;  %v1630_v51 = vmax.f32 %v1560_v55, 0.0 }
 0x2e7   :  { %v1881_v4 = vadd.f32 %v1765_v32, %v3263_v10  ;;  %v1758_v20 = vmax.f32 %v1756_v38, %v1757_v13  ;;  %v1776_v49 = vrot.slane %v1775_v8, 2  ;;  %v1769_v34 = vrot.slane %v1768_v59, 2 }
 0x2e8   :  { %v1789_v54 = vmax.f32 %v1787_v5, %v1788_v21  ;;  %v1782_v43 = vmax.f32 %v1780_v30, %v1781_v61  ;;  %v1801_v18 = vsel %vm436_vm1, %v1631_v36, -inf  ;;  %v1794_v39 = vsel %vm436_vm1, %v1630_v51, -inf  ;;  %v2499_v45 = vpop.f32.mrb[44].mxu1 }
 0x2e9   :  { %v1880_v46 = vadd.f32 %v1758_v20, %v3266_v57  ;;  %v1777_v53 = vmax.f32 %v1775_v8, %v1776_v49  ;;  %v1770_v7 = vmax.f32 %v1768_v59, %v1769_v34  ;;  %v1802_v37 = vrot.slane %v1801_v18, 4  ;;  %v1569_v6 = vpop.f32.mrb[45].mxu1 }
 0x2ea   :  { %v1790_v33 = vrot.slane %v1789_v54, 2  ;;  %v1783_v23 = vrot.slane %v1782_v43, 2  ;;  %v1795_v22 = vrot.slane %v1794_v39, 4  ;;  %v1575_v10 = vadd.f32 %v2499_v45, %v3360_v19 }
 0x2eb   :  { %v1960_v1 = vsel %vm1939_vm2, %v1881_v4, %v1880_v46  ;;  %v1778_v27 = vrot.slane %v1777_v53, 1  ;;  %v1771_v63 = vrot.slane %v1770_v7, 1  ;;  %v1803_v60 = vmax.f32 %v1801_v18, %v1802_v37 }
 0x2ec   :  { %v1791_v14 = vmax.f32 %v1789_v54, %v1790_v33  ;;  %v1784_v17 = vmax.f32 %v1782_v43, %v1783_v23  ;;  %v1796_v31 = vmax.f32 %v1794_v39, %v1795_v22  ;;  %v1633_v42 = vmax.f32 %v1575_v10, 0.0  ;;  %v2502_v38 = vpop.f32.mrb[46].mxu1 }
 0x2ed   :  { %v1779_v57 = vmax.f32 %v1777_v53, %v1778_v27  ;;  %v1772_v28 = vmax.f32 %v1770_v7, %v1771_v63  ;;  %v1804_v9 = vrot.slane %v1803_v60, 2  ;;  %v1570_v29 = vadd.f32 %v1569_v6, %v3360_v19  ;;  %v1579_v5 = vpop.f32.mrb[47].mxu1 }
 0x2ee   :  { %v1792_v30 = vrot.slane %v1791_v14, 1  ;;  %v1785_v41 = vrot.slane %v1784_v17, 1  ;;  %v1797_v55 = vrot.slane %v1796_v31, 2  ;;  %v1815_v32 = vsel %vm436_vm1, %v1633_v42, -inf }
 0x2ef   :  { %v3464_v13 = vadd.f32 %v1779_v57, %v3274_v62  ;;  %v1882_v8 = vadd.f32 %v1772_v28, %v3278_v48  ;;  %v1805_v59 = vmax.f32 %v1803_v60, %v1804_v9  ;;  %v1816_v21 = vrot.slane %v1815_v32, 4 }
 0x2f0   :  { %v1793_v61 = vmax.f32 %v1791_v14, %v1792_v30  ;;  %v1786_v36 = vmax.f32 %v1784_v17, %v1785_v41  ;;  %v1798_v51 = vmax.f32 %v1796_v31, %v1797_v55  ;;  %v1632_v4 = vmax.f32 %v1570_v29, 0.0  ;;  %v2505_v20 = vpop.f32.mrb[48].mxu1 }
 0x2f1   :  { %v1961_v49 = vsel %vm1941_vm3, %v1882_v8, %v1960_v1  ;;  %v1806_v34 = vrot.slane %v1805_v59, 1  ;;  %v1817_v54 = vmax.f32 %v1815_v32, %v1816_v21  ;;  %v1955_v43 = vsel %vm1943_vm4, %v3417_v26, %v3425_v16  ;;  %v1589_v18 = vpop.f32.mrb[49].mxu1 }
 0x2f2   :  { %v3472_v62 = vadd.f32 %v1793_v61, %v3284_v44  ;;  %v1884_v48 = vadd.f32 %v1786_v36, %v3289_v25  ;;  %v1799_v39 = vrot.slane %v1798_v51, 1  ;;  %v1808_v45 = vsel %vm436_vm1, %v1632_v4, -inf }
 0x2f3   :  { %v1807_v46 = vmax.f32 %v1805_v59, %v1806_v34  ;;  %v1818_v53 = vrot.slane %v1817_v54, 2  ;;  %v1809_v7 = vrot.slane %v1808_v45, 4  ;;  %v1956_v37 = vsel %vm1945_vm5, %v3436_v15, %v1955_v43 }
 0x2f4   :  { %v1800_v6 = vmax.f32 %v1798_v51, %v1799_v39  ;;  %v1957_v33 = vsel %vm1947_vm6, %v3428_v12, %v1956_v37  ;;  %v1585_v26 = vadd.f32 %v2502_v38, %v3360_v19  ;;  %v1580_v44 = vadd.f32 %v1579_v5, %v3360_v19 }
 0x2f5   :  { %v1819_v16 = vmax.f32 %v1817_v54, %v1818_v53  ;;  %v1810_v23 = vmax.f32 %v1808_v45, %v1809_v7  ;;  %v1958_v25 = vsel %vm1949_vm7, %v3447_v52, %v1957_v33  ;;  %v1595_v22 = vadd.f32 %v2505_v20, %v3360_v19 }
 0x2f6   :  { %v1886_v10 = vadd.f32 %v1800_v6, %v3300_v35  ;;  %v1959_v15 = vsel %vm1951_vm8, %v3444_v3, %v1958_v25  ;;  %v1635_v1 = vmax.f32 %v1585_v26, 0.0  ;;  %v1634_v27 = vmax.f32 %v1580_v44, 0.0  ;;  %v2508_v17 = vpop.f32.mrb[50].mxu1 }
 0x2f7   :  { %v1820_v63 = vrot.slane %v1819_v16, 1  ;;  %v1811_v12 = vrot.slane %v1810_v23, 2  ;;  %2518 = vmatmul.mubr.msk.f32.vlgmr.msra.gmra.mrb[44].mxu0 %vm436_vm1, %v1959_v15  ;;  %v1637_v60 = vmax.f32 %v1595_v22, 0.0  ;;  %v1590_v14 = vadd.f32 %v1589_v18, %v3360_v19  ;;  %v1599_v35 = vpop.f32.mrb[51].mxu1 }
 0x2f8   :  { %v1829_v31 = vsel %vm436_vm1, %v1635_v1, -inf  ;;  %v1822_v52 = vsel %vm436_vm1, %v1634_v27, -inf  ;;  %v1605_v42 = vadd.f32 %v2508_v17, %v3360_v19  ;;  %v1887_v38 = vadd.f32 %v1807_v46, %v3315_v24 }
 0x2f9   :  { %v1821_v3 = vmax.f32 %v1819_v16, %v1820_v63  ;;  %v1812_v57 = vmax.f32 %v1810_v23, %v1811_v12  ;;  %v1830_v28 = vrot.slane %v1829_v31, 4  ;;  %v1823_v9 = vrot.slane %v1822_v52, 4 }
 0x2fa   :  { %v1843_v29 = vsel %vm436_vm1, %v1637_v60, -inf  ;;  %v1636_v5 = vmax.f32 %v1590_v14, 0.0  ;;  %v1639_v30 = vmax.f32 %v1605_v42, 0.0  ;;  %v1600_v41 = vadd.f32 %v1599_v35, %v3360_v19 }
 0x2fb   :  { %v1889_v55 = vadd.f32 %v1821_v3, %v3309_v40  ;;  %v1813_v32 = vrot.slane %v1812_v57, 1  ;;  %v1831_v8 = vmax.f32 %v1829_v31, %v1830_v28  ;;  %v1824_v59 = vmax.f32 %v1822_v52, %v1823_v9 }
 0x2fc   :  { %v1844_v21 = vrot.slane %v1843_v29, 4  ;;  %v1836_v61 = vsel %vm436_vm1, %v1636_v5, -inf  ;;  %v1857_v24 = vsel %vm436_vm1, %v1639_v30, -inf  ;;  %v1638_v36 = vmax.f32 %v1600_v41, 0.0 }
 0x2fd   :  { %v1814_v51 = vmax.f32 %v1812_v57, %v1813_v32  ;;  %v1832_v4 = vrot.slane %v1831_v8, 2  ;;  %v1825_v20 = vrot.slane %v1824_v59, 2  ;;  %v1837_v34 = vrot.slane %v1836_v61, 4 }
 0x2fe   :  { %v1845_v54 = vmax.f32 %v1843_v29, %v1844_v21  ;;  %v1858_v43 = vrot.slane %v1857_v24, 4  ;;  %v1850_v18 = vsel %vm436_vm1, %v1638_v36, -inf  ;;  %v1962_v40 = vsel %vm1943_vm4, %v3464_v13, %v1961_v49 }
 0x2ff   :  { %v1888_v19 = vadd.f32 %v1814_v51, %v3312_v2  ;;  %v1833_v39 = vmax.f32 %v1831_v8, %v1832_v4  ;;  %v1826_v45 = vmax.f32 %v1824_v59, %v1825_v20  ;;  %v1838_v46 = vmax.f32 %v1836_v61, %v1837_v34 }
 0x300   :  { %v1846_v53 = vrot.slane %v1845_v54, 2  ;;  %v1859_v7 = vmax.f32 %v1857_v24, %v1858_v43  ;;  %v1851_v37 = vrot.slane %v1850_v18, 4  ;;  %v1963_v6 = vsel %vm1945_vm5, %v1884_v48, %v1962_v40 }
 0x301   :  { %v1967_v33 = vsel %vm1939_vm2, %v1889_v55, %v1888_v19  ;;  %v1834_v26 = vrot.slane %v1833_v39, 1  ;;  %v1827_v44 = vrot.slane %v1826_v45, 1  ;;  %v1839_v16 = vrot.slane %v1838_v46, 2 }
 0x302   :  { %v1847_v23 = vmax.f32 %v1845_v54, %v1846_v53  ;;  %v1860_v25 = vrot.slane %v1859_v7, 2  ;;  %v1852_v22 = vmax.f32 %v1850_v18, %v1851_v37  ;;  %v1964_v13 = vsel %vm1947_vm6, %v3472_v62, %v1963_v6 }
 0x303   :  { %v1835_v2 = vmax.f32 %v1833_v39, %v1834_v26  ;;  %v1828_v49 = vmax.f32 %v1826_v45, %v1827_v44  ;;  %v1840_v15 = vmax.f32 %v1838_v46, %v1839_v16  ;;  %v1965_v1 = vsel %vm1949_vm7, %v1886_v10, %v1964_v13 }
 0x304   :  { %v1848_v27 = vrot.slane %v1847_v23, 1  ;;  %v1861_v63 = vmax.f32 %v1859_v7, %v1860_v25  ;;  %v1853_v12 = vrot.slane %v1852_v22, 2  ;;  %v1966_v48 = vsel %vm1951_vm8, %v1887_v38, %v1965_v1 }
 0x305   :  { %v1891_v60 = vadd.f32 %v1835_v2, %v3321_v0  ;;  %v1890_v14 = vadd.f32 %v1828_v49, %v3329_v56  ;;  %v1841_v17 = vrot.slane %v1840_v15, 1  ;;  %2520 = vmatprep.mubr.msk.f32.mxu0 %vm436_vm1, %v1966_v48 }
 0x306   :  { %v1849_v31 = vmax.f32 %v1847_v23, %v1848_v27  ;;  %v1862_v52 = vrot.slane %v1861_v63, 1  ;;  %v1854_v62 = vmax.f32 %v1852_v22, %v1853_v12 }
 0x307   :  { %v1968_v42 = vsel %vm1941_vm3, %v1890_v14, %v1967_v33  ;;  %v1842_v35 = vmax.f32 %v1840_v15, %v1841_v17 }
 0x308   :  { %v1893_v10 = vadd.f32 %v1849_v31, %v3335_v50  ;;  %v1863_v3 = vmax.f32 %v1861_v63, %v1862_v52  ;;  %v1855_v57 = vrot.slane %v1854_v62, 1  ;;  %v1969_v28 = vsel %vm1943_vm4, %v1891_v60, %v1968_v42  ;;  %v2204_v50 = vld [vmem:[%s3555_s5] ss:$0 sm:$0xff] }
 0x309   :  { %v1892_v38 = vadd.f32 %v1842_v35, %v3337_v58 }
 0x30a   :  { %v1856_v0 = vmax.f32 %v1854_v62, %v1855_v57  ;;  %v1895_v56 = vadd.f32 %v1863_v3, %v3340_v47 }
 0x30b   :  { %v1970_v9 = vsel %vm1945_vm5, %v1892_v38, %v1969_v28 }
 0x30c   :  { %v1894_v29 = vadd.f32 %v1856_v0, %v3342_v11  ;;  %v1971_v5 = vsel %vm1947_vm6, %v1893_v10, %v1970_v9 }
 0x30e   :  { %v1972_v30 = vsel %vm1949_vm7, %v1894_v29, %v1971_v5 }
 0x30f   :  { %v1973_v41 = vsel %vm1951_vm8, %v1895_v56, %v1972_v30 }
 0x310   :  { %2521 = vmatmul.mubr.msk.f32.gmra.mrb[46].mxu0 %vm436_vm1, %v1973_v41 }
 0x3ca   :  { %v2519_v58 = vpop.f32.mrb[44].mxu0 }
 0x3cb   :  { %v2054_v55 = vadd.f32 %v2519_v58, %v2204_v50  ;;  %v2048_v32 = vpop.f32.mrb[45].mxu0 }
 0x3cc   :  { %v2049_v47 = vadd.f32 %v2204_v50, %v2048_v32 }
 0x3cd   :  { %v2210_v8 = vmul.f32 -1.442695, %v2054_v55  ;;  %2096 = vst [vmem:[%s3556_s6 + $0x18] sm:$0xff] %v2054_v55 }
 0x3ce   :  { %v2209_v11 = vmul.f32 -1.442695, %v2049_v47  ;;  %2095 = vst [vmem:[%s3556_s6 + $0x8] sm:$0xff] %v2049_v47 }
 0x3cf   :  { %2570 = vpow2.f32 %v2210_v8 }
 0x3d0   :  { %2572 = vpow2.f32 %v2209_v11 }
 0x3d9   :  { %v2571_v59 = vpop.eup %2570 }
 0x3da   :  { %v2573_v21 = vpop.eup %2572  ;;  %v2080_v61 = vadd.f32 1.0, %v2571_v59 }
 0x3db   :  { %v2079_v24 = vadd.f32 1.0, %v2573_v21 }
 0x3dc   :  { %2574 = vrcp.f32 %v2080_v61 }
 0x3dd   :  { %2576 = vrcp.f32 %v2079_v24 }
 0x3e3   :  { %v2522_v36 = vpop.f32.mrb[46].mxu0 }
 0x3e4   :  { %v2064_v51 = vadd.f32 %v2522_v36, %v2204_v50  ;;  %v2058_v4 = vpop.f32.mrb[47].mxu0 }
 0x3e5   :  { %v2059_v20 = vadd.f32 %v2204_v50, %v2058_v4 }
 0x3e6   :  { %v2575_v34 = vpop.eup %2574  ;;  %v2212_v54 = vmul.f32 -1.442695, %v2064_v51  ;;  %2098 = vst [vmem:[%s3556_s6 + $0x38] sm:$0xff] %v2064_v51 }
 0x3e7   :  { %v2577_v43 = vpop.eup %2576  ;;  %2092 = vst [vmem:[%s3556_s6 + $0x10] sm:$0xff] %v2575_v34  ;;  %v2211_v18 = vmul.f32 -1.442695, %v2059_v20  ;;  %2097 = vst [vmem:[%s3556_s6 + $0x28] sm:$0xff] %v2059_v20 }
 0x3e8   :  { %2091 = vst [vmem:[%s3556_s6] sm:$0xff] %v2577_v43  ;;  %2578 = vpow2.f32 %v2212_v54 }
 0x3e9   :  { %2580 = vpow2.f32 %v2211_v18 }
 0x3f2   :  { %v2579_v40 = vpop.eup %2578 }
 0x3f3   :  { %v2581_v19 = vpop.eup %2580  ;;  %v2082_v39 = vadd.f32 1.0, %v2579_v40 }
 0x3f4   :  { %v2081_v45 = vadd.f32 1.0, %v2581_v19 }
 0x3f5   :  { %2582 = vrcp.f32 %v2082_v39 }
 0x3f6   :  { %2584 = vrcp.f32 %v2081_v45 }
 0x3ff   :  { %v2583_v46 = vpop.eup %2582 }
 0x400   :  { %v2585_v53 = vpop.eup %2584  ;;  %2094 = vst [vmem:[%s3556_s6 + $0x30] sm:$0xff] %v2583_v46 }
 0x401   :  { %2093 = vst [vmem:[%s3556_s6 + $0x20] sm:$0xff] %v2585_v53 }
 0x402   :  { %2103 = vsyncpa [#allocation3], 1 }

</bundles_post_ra>
